<compile_context>
chip_gen: v7x
topology: tpu7x:2x2x1
jax: 0.10.0
libtpu: 0.0.40
codegen_flags: <defaults>
</compile_context>

<pallas_src>
import functools
import math

import jax
import jax.numpy as jnp
from jax.experimental import pallas as pl
from jax.experimental.pallas import tpu as pltpu


def _layer_norm(v, w, b, eps=1e-5):
    mu = jnp.mean(v, axis=-1, keepdims=True)
    var = jnp.mean((v - mu) ** 2, axis=-1, keepdims=True)
    return (v - mu) * jax.lax.rsqrt(var + eps) * w + b


def transformer_kernel(x_ref, posb_ref, emb_w_ref,
                       in_w_ref, in_b_ref, out_w_ref, out_b_ref,
                       l1w_ref, l1b_ref, l2w_ref, l2b_ref,
                       n1w_ref, n1b_ref, n2w_ref, n2b_ref,
                       dec_w_ref, dec_b_ref, out_ref,
                       *, num_layers, nhead, d_model, seq_len, batch_block,
                       input_size, out_width):
    TB, S, D, H = batch_block, seq_len, d_model, nhead
    hd = D // H
    N = TB * S
    scale = 1.0 / math.sqrt(hd)
    bf16 = jnp.bfloat16

    x3 = x_ref[...]
    if input_size == 1:
        # x arrives pre-broadcast to (TB, S, D) (lane-dense); the K=1 "matmul"
        # is a VPU multiply, never a degenerate MXU push or 1-lane layout.
        h3 = x3 * emb_w_ref[...].reshape(1, 1, D)
    else:
        h3 = jnp.dot(x3.reshape(N, input_size).astype(bf16),
                     emb_w_ref[...].astype(bf16),
                     preferred_element_type=jnp.float32).reshape(TB, S, D)
    # positional encoding with the embedding bias already folded in (wrapper).
    h3 = h3 + posb_ref[...][None]                          # (TB, S, D)
    h = h3.reshape(N, D)                                   # f32 residual stream

    for l in range(num_layers):                            # static unroll (L small)
        # ---------------- multi-head self-attention ----------------
        # One fused QKV GEMM per layer (96-lane-wide output, unmasked stores).
        qkv = jnp.dot(h.astype(bf16), in_w_ref[l],
                      preferred_element_type=jnp.float32) + in_b_ref[l]   # (N, 3D)
        q3 = qkv[:, 0:D].reshape(TB, S, D).astype(bf16)
        k3 = qkv[:, D:2 * D].reshape(TB, S, D).astype(bf16)
        v3 = qkv[:, 2 * D:3 * D].reshape(TB, S, D).astype(bf16)

        head_out = []
        for hh in range(H):
            sl = slice(hh * hd, (hh + 1) * hd)
            s = jnp.einsum("bqd,bkd->bqk", q3[:, :, sl], k3[:, :, sl],
                           preferred_element_type=jnp.float32) * scale
            s = s - jnp.max(s, axis=-1, keepdims=True)
            p = jnp.exp(s)
            p = p * pl.reciprocal(jnp.sum(p, axis=-1, keepdims=True), approx=True)
            o3 = jnp.einsum("bqk,bkd->bqd", p.astype(bf16), v3[:, :, sl],
                            preferred_element_type=jnp.float32)           # (TB,S,hd)
            head_out.append(o3.reshape(N, hd))
        o = jnp.concatenate(head_out, axis=-1)                            # (N, D)
        # One fused out-projection GEMM on the concatenated head outputs.
        attn = jnp.dot(o.astype(bf16), out_w_ref[l],
                       preferred_element_type=jnp.float32) + out_b_ref[l]
        # post-norm residual (PyTorch norm_first=False default), f32
        h = _layer_norm(h + attn, n1w_ref[l], n1b_ref[l])

        # ---------------- feed-forward (ReLU) ----------------
        ff = jnp.dot(h.astype(bf16), l1w_ref[l],
                     preferred_element_type=jnp.float32) + l1b_ref[l]
        ff = jnp.maximum(ff, 0.0)
        ff = jnp.dot(ff.astype(bf16), l2w_ref[l],
                     preferred_element_type=jnp.float32) + l2b_ref[l]
        h = _layer_norm(h + ff, n2w_ref[l], n2b_ref[l])

    # ---------------- decoder on the last time-step ----------------
    # (1-wide output matmul replaced by f32 VPU multiply + lane reduction)
    last = h.reshape(TB, S, D)[:, S - 1:S, :].reshape(TB, D)
    pred = jnp.sum(last * dec_w_ref[...], axis=-1, keepdims=True) + dec_b_ref[...]

    # lane-dense output: prediction of local batch row b goes to lane b of one
    # (1, out_width) row -> single unmasked store instead of last-dim-1 blocks.
    lane = jax.lax.broadcasted_iota(jnp.int32, (TB, out_width), 1)
    row = jax.lax.broadcasted_iota(jnp.int32, (TB, out_width), 0)
    scattered = jnp.where(lane == row, pred, 0.0)           # (TB, out_width)
    out_ref[0] = jnp.sum(scattered, axis=0, keepdims=True)  # (1, out_width)


def make_positional_encoding(d_model, max_len):
    position = jnp.arange(max_len, dtype=jnp.float32)[:, None]            # (L, 1)
    div_term = jnp.exp(jnp.arange(0, d_model, 2, dtype=jnp.float32)
                       * (-math.log(10000.0) / d_model))                   # (D/2,)
    sin_v = jnp.sin(position * div_term)                                   # (L, D/2)
    cos_v = jnp.cos(position * div_term)                                   # (L, D/2)
    pe = jnp.stack([sin_v, cos_v], axis=-1).reshape(max_len, d_model)      # interleave
    return pe[None]                                                        # (1, L, D)


def init_params(key, input_size, d_model, nhead, num_layers, seq_length):
    ks = list(jax.random.split(key, 12))

    def w(k, shape):
        return (jax.random.normal(k, shape, dtype=jnp.float32) * 0.02).astype(jnp.float32)

    L, D = num_layers, d_model
    params = dict(
        pe=make_positional_encoding(D, seq_length),
        emb_w=w(ks[0], (input_size, D)),          # transposed (in, out)
        emb_b=w(ks[1], (1, D)),
        in_w=w(ks[2], (L, D, 3 * D)),
        in_b=w(ks[3], (L, 1, 3 * D)),
        out_w=w(ks[4], (L, D, D)),
        out_b=w(ks[5], (L, 1, D)),
        l1_w=w(ks[6], (L, D, 4 * D)),
        l1_b=w(ks[7], (L, 1, 4 * D)),
        l2_w=w(ks[8], (L, 4 * D, D)),
        l2_b=w(ks[9], (L, 1, D)),
        n1_w=jnp.ones((L, 1, D), jnp.float32),
        n1_b=jnp.zeros((L, 1, D), jnp.float32),
        n2_w=jnp.ones((L, 1, D), jnp.float32),
        n2_b=jnp.zeros((L, 1, D), jnp.float32),
        dec_w=w(ks[10], (D, 1)),                  # transposed (in, out)
        dec_b=w(ks[11], (1, 1)),
    )
    return params


def _pack_kernel_params(params, *, d_model, seq_len):
    """Re-layout canonical params into the folded / bf16 layout the kernel uses."""
    D = d_model
    bf16 = jnp.bfloat16
    posb = params["pe"][0, :seq_len] + params["emb_b"]    # (S, D): pe + emb bias folded
    return dict(
        posb=posb,
        emb_w=params["emb_w"],                            # f32 (VPU path / small GEMM)
        in_w=params["in_w"].astype(bf16),                 # (L, D, 3D) bf16 MXU operand
        in_b=params["in_b"],
        out_w=params["out_w"].astype(bf16),               # (L, D, D)
        out_b=params["out_b"],
        l1w=params["l1_w"].astype(bf16),                  # (L, D, 4D)
        l1b=params["l1_b"],
        l2w=params["l2_w"].astype(bf16),                  # (L, 4D, D)
        l2b=params["l2_b"],
        n1w=params["n1_w"], n1b=params["n1_b"],
        n2w=params["n2_w"], n2b=params["n2_b"],
        dec_w=params["dec_w"].reshape(1, D),              # f32 (VPU reduce)
        dec_b=params["dec_b"],
    )


def _default_batch_block(B):
    """v7x has 2 TensorCores: split the batch so the 'parallel' grid axis has
    >= 2 steps. Single-TC v5e/v6e: whole batch in one step (per-step overhead
    dominates at these tiny shapes)."""
    try:
        kind = jax.devices()[0].device_kind.lower()
    except Exception:
        return B
    if "v7" in kind:
        return max(1, (B + 1) // 2)
    return B


def transformer_predictor(x, params, *, num_layers, nhead, d_model, batch_block=None):
    B, S, Ein = x.shape
    TB = _default_batch_block(B) if batch_block is None else max(1, min(int(batch_block), B))
    NB = pl.cdiv(B, TB)
    pad = NB * TB - B
    if pad:
        x = jnp.concatenate([x, jnp.zeros((pad, S, Ein), x.dtype)], axis=0)

    if Ein == 1:
        # Lane-dense input presentation (layout plumbing only): broadcast the
        # scalar feature across d_model so the kernel never sees a last-dim-1
        # block; the embedding multiply itself stays in-kernel.
        x_in = jnp.broadcast_to(x, (NB * TB, S, d_model))
        ein_block = d_model
    else:
        x_in = x
        ein_block = Ein

    kp = _pack_kernel_params(params, d_model=d_model, seq_len=S)
    order = ["posb", "emb_w", "in_w", "in_b", "out_w", "out_b",
             "l1w", "l1b", "l2w", "l2b", "n1w", "n1b", "n2w", "n2b",
             "dec_w", "dec_b"]
    args = [kp[k] for k in order]

    out_width = 128 * pl.cdiv(TB, 128)   # lane-dense output row

    # Grid-invariant weights: whole-array, resident in VMEM once (single copy,
    # no per-step double-buffering).
    weight_spec = pl.BlockSpec(memory_space=pltpu.MemorySpace.VMEM)
    in_specs = ([pl.BlockSpec((TB, S, ein_block), lambda b: (b, 0, 0))]
                + [weight_spec] * len(args))

    kernel = functools.partial(
        transformer_kernel,
        num_layers=num_layers, nhead=nhead, d_model=d_model, seq_len=S,
        batch_block=TB, input_size=Ein, out_width=out_width)

    out = pl.pallas_call(
        kernel,
        out_shape=jax.ShapeDtypeStruct((NB, 1, out_width), jnp.float32),
        grid_spec=pltpu.PrefetchScalarGridSpec(
            num_scalar_prefetch=0,
            grid=(NB,),
            in_specs=in_specs,
            out_specs=pl.BlockSpec((1, 1, out_width), lambda b: (b, 0, 0)),
        ),
        compiler_params=pltpu.CompilerParams(
            dimension_semantics=("parallel",),
            # explicit VMEM budget with headroom (v7x: 64 MiB physical).
            vmem_limit_bytes=48 * 1024 * 1024,
        ),
    )(x_in, *args)

    preds = out[:, 0, :TB].reshape(NB * TB, 1)
    return preds[:B]


def reference_forward(x, params, *, num_layers, nhead, d_model):
    """Pure-JAX f32 reference with identical math (sanity check)."""
    B, S, _ = x.shape
    head_dim = d_model // nhead
    scale = 1.0 / math.sqrt(head_dim)
    h = x @ params["emb_w"] + params["emb_b"]
    h = h + params["pe"][:, :S]

    def ln(v, w, b):
        mu = v.mean(-1, keepdims=True)
        var = ((v - mu) ** 2).mean(-1, keepdims=True)
        return (v - mu) * jax.lax.rsqrt(var + 1e-5) * w + b

    for l in range(num_layers):
        qkv = h @ params["in_w"][l] + params["in_b"][l]
        q, k, v = jnp.split(qkv, 3, axis=-1)
        qh = q.reshape(B, S, nhead, head_dim).transpose(0, 2, 1, 3)
        kh = k.reshape(B, S, nhead, head_dim).transpose(0, 2, 1, 3)
        vh = v.reshape(B, S, nhead, head_dim).transpose(0, 2, 1, 3)
        s = jnp.einsum("bhqd,bhkd->bhqk", qh, kh) * scale
        p = jax.nn.softmax(s, axis=-1)
        o = jnp.einsum("bhqk,bhkd->bhqd", p, vh).transpose(0, 2, 1, 3).reshape(B, S, d_model)
        o = o @ params["out_w"][l] + params["out_b"][l]
        h = ln(h + o, params["n1_w"][l], params["n1_b"][l])
        ff = jnp.maximum(h @ params["l1_w"][l] + params["l1_b"][l], 0.0)
        ff = ff @ params["l2_w"][l] + params["l2_b"][l]
        h = ln(h + ff, params["n2_w"][l], params["n2_b"][l])
    return h[:, -1, :] @ params["dec_w"] + params["dec_b"]


if __name__ == "__main__":
    B, input_size, d_model, nhead, num_layers, seq_length = 2, 1, 32, 4, 2, 8

    key = jax.random.PRNGKey(0)
    k_x, k_p = jax.random.split(key)
    x = jax.random.normal(k_x, (B, seq_length, input_size), dtype=jnp.float32)
    params = init_params(k_p, input_size, d_model, nhead, num_layers, seq_length)

    out = transformer_predictor(x, params, num_layers=num_layers, nhead=nhead,
                                d_model=d_model)
    out = jax.block_until_ready(out)

    ref = reference_forward(x, params, num_layers=num_layers, nhead=nhead,
                            d_model=d_model)
    assert out.shape == (B, 1), out.shape
    # Tolerance slightly loosened vs. the pure-f32 check: MXU operands are bf16
    # and the softmax uses the approx EUP reciprocal (both review-requested).
    assert jnp.allclose(out, ref, atol=2e-3, rtol=2e-3), (out, ref)
    print("KERNEL_OK")
</pallas_src>

<mosaic_0001>
module attributes {stable_mosaic.version = 11 : i64} {
  func.func @transformer_kernel(%arg0: i32, %arg1: memref<2x8x32xf32, #tpu.memory_space<vmem>>, %arg2: memref<8x32xf32, #tpu.memory_space<vmem>>, %arg3: memref<1x32xf32, #tpu.memory_space<vmem>>, %arg4: memref<2x32x96xbf16, #tpu.memory_space<vmem>>, %arg5: memref<2x1x96xf32, #tpu.memory_space<vmem>>, %arg6: memref<2x32x32xbf16, #tpu.memory_space<vmem>>, %arg7: memref<2x1x32xf32, #tpu.memory_space<vmem>>, %arg8: memref<2x32x128xbf16, #tpu.memory_space<vmem>>, %arg9: memref<2x1x128xf32, #tpu.memory_space<vmem>>, %arg10: memref<2x128x32xbf16, #tpu.memory_space<vmem>>, %arg11: memref<2x1x32xf32, #tpu.memory_space<vmem>>, %arg12: memref<2x1x32xf32, #tpu.memory_space<vmem>>, %arg13: memref<2x1x32xf32, #tpu.memory_space<vmem>>, %arg14: memref<2x1x32xf32, #tpu.memory_space<vmem>>, %arg15: memref<2x1x32xf32, #tpu.memory_space<vmem>>, %arg16: memref<1x32xf32, #tpu.memory_space<vmem>>, %arg17: memref<1x1xf32, #tpu.memory_space<vmem>>, %arg18: memref<1x1x128xf32, #tpu.memory_space<vmem>>) attributes {dimension_semantics = [#tpu.dimension_semantics<parallel>], iteration_bounds = array<i64: 1>, scalar_prefetch = 0 : i64, scratch_operands = 0 : i64, tpu.core_type = #tpu.core_type<tc>, window_params = [{transform_indices = @transform_0, window_bounds = array<i64: 2, 8, 32>}, {pipeline_mode = #tpu.pipeline_mode<synchronous>, transform_indices = @transform_1, window_bounds = array<i64: 8, 32>}, {pipeline_mode = #tpu.pipeline_mode<synchronous>, transform_indices = @transform_2, window_bounds = array<i64: 1, 32>}, {pipeline_mode = #tpu.pipeline_mode<synchronous>, transform_indices = @transform_3, window_bounds = array<i64: 2, 32, 96>}, {pipeline_mode = #tpu.pipeline_mode<synchronous>, transform_indices = @transform_4, window_bounds = array<i64: 2, 1, 96>}, {pipeline_mode = #tpu.pipeline_mode<synchronous>, transform_indices = @transform_5, window_bounds = array<i64: 2, 32, 32>}, {pipeline_mode = #tpu.pipeline_mode<synchronous>, transform_indices = @transform_6, window_bounds = array<i64: 2, 1, 32>}, {pipeline_mode = #tpu.pipeline_mode<synchronous>, transform_indices = @transform_7, window_bounds = array<i64: 2, 32, 128>}, {pipeline_mode = #tpu.pipeline_mode<synchronous>, transform_indices = @transform_8, window_bounds = array<i64: 2, 1, 128>}, {pipeline_mode = #tpu.pipeline_mode<synchronous>, transform_indices = @transform_9, window_bounds = array<i64: 2, 128, 32>}, {pipeline_mode = #tpu.pipeline_mode<synchronous>, transform_indices = @transform_10, window_bounds = array<i64: 2, 1, 32>}, {pipeline_mode = #tpu.pipeline_mode<synchronous>, transform_indices = @transform_11, window_bounds = array<i64: 2, 1, 32>}, {pipeline_mode = #tpu.pipeline_mode<synchronous>, transform_indices = @transform_12, window_bounds = array<i64: 2, 1, 32>}, {pipeline_mode = #tpu.pipeline_mode<synchronous>, transform_indices = @transform_13, window_bounds = array<i64: 2, 1, 32>}, {pipeline_mode = #tpu.pipeline_mode<synchronous>, transform_indices = @transform_14, window_bounds = array<i64: 2, 1, 32>}, {pipeline_mode = #tpu.pipeline_mode<synchronous>, transform_indices = @transform_15, window_bounds = array<i64: 1, 32>}, {pipeline_mode = #tpu.pipeline_mode<synchronous>, transform_indices = @transform_16, window_bounds = array<i64: 1, 1>}, {transform_indices = @transform_17, window_bounds = array<i64: 1, 1, 128>}]} {
    %c0 = arith.constant 0 : index
    %c0_0 = arith.constant 0 : index
    %c0_1 = arith.constant 0 : index
    %0 = vector.load %arg1[%c0, %c0_0, %c0_1] : memref<2x8x32xf32, #tpu.memory_space<vmem>>, vector<2x8x32xf32>
    %c0_2 = arith.constant 0 : index
    %c0_3 = arith.constant 0 : index
    %1 = vector.load %arg3[%c0_2, %c0_3] : memref<1x32xf32, #tpu.memory_space<vmem>>, vector<1x32xf32>
    %2 = vector.shape_cast %1 : vector<1x32xf32> to vector<1x1x32xf32>
    %3 = vector.broadcast %2 : vector<1x1x32xf32> to vector<2x8x32xf32>
    %4 = arith.mulf %0, %3 : vector<2x8x32xf32>
    %c0_4 = arith.constant 0 : index
    %c0_5 = arith.constant 0 : index
    %5 = vector.load %arg2[%c0_4, %c0_5] : memref<8x32xf32, #tpu.memory_space<vmem>>, vector<8x32xf32>
    %6 = vector.shape_cast %5 : vector<8x32xf32> to vector<1x8x32xf32>
    %7 = vector.broadcast %6 : vector<1x8x32xf32> to vector<2x8x32xf32>
    %8 = arith.addf %4, %7 : vector<2x8x32xf32>
    %9 = vector.shape_cast %8 : vector<2x8x32xf32> to vector<16x32xf32>
    %10 = arith.truncf %9 : vector<16x32xf32> to vector<16x32xbf16>
    %c0_6 = arith.constant 0 : index
    %c0_7 = arith.constant 0 : index
    %c0_8 = arith.constant 0 : index
    %11 = vector.load %arg4[%c0_6, %c0_7, %c0_8] : memref<2x32x96xbf16, #tpu.memory_space<vmem>>, vector<1x32x96xbf16>
    %12 = vector.shape_cast %11 : vector<1x32x96xbf16> to vector<32x96xbf16>
    %cst = arith.constant dense<0.000000e+00> : vector<16x96xf32>
    %13 = tpu.matmul %10, %12, %cst {dimension_numbers = #tpu.dot_dimension_numbers<[1], [0], [0], [1], [0, 0, 1, 1], [], []>} : vector<16x32xbf16>, vector<32x96xbf16>, vector<16x96xf32> -> vector<16x96xf32>
    %c0_9 = arith.constant 0 : index
    %c0_10 = arith.constant 0 : index
    %c0_11 = arith.constant 0 : index
    %14 = vector.load %arg5[%c0_9, %c0_10, %c0_11] : memref<2x1x96xf32, #tpu.memory_space<vmem>>, vector<1x1x96xf32>
    %15 = vector.shape_cast %14 : vector<1x1x96xf32> to vector<1x96xf32>
    %16 = vector.broadcast %15 : vector<1x96xf32> to vector<16x96xf32>
    %17 = arith.addf %13, %16 : vector<16x96xf32>
    %18 = vector.extract_strided_slice %17 {offsets = [0, 0], sizes = [16, 32], strides = [1, 1]} : vector<16x96xf32> to vector<16x32xf32>
    %19 = vector.shape_cast %18 : vector<16x32xf32> to vector<2x8x32xf32>
    %20 = arith.truncf %19 : vector<2x8x32xf32> to vector<2x8x32xbf16>
    %21 = vector.extract_strided_slice %17 {offsets = [0, 32], sizes = [16, 32], strides = [1, 1]} : vector<16x96xf32> to vector<16x32xf32>
    %22 = vector.shape_cast %21 : vector<16x32xf32> to vector<2x8x32xf32>
    %23 = arith.truncf %22 : vector<2x8x32xf32> to vector<2x8x32xbf16>
    %24 = vector.extract_strided_slice %17 {offsets = [0, 64], sizes = [16, 32], strides = [1, 1]} : vector<16x96xf32> to vector<16x32xf32>
    %25 = vector.shape_cast %24 : vector<16x32xf32> to vector<2x8x32xf32>
    %26 = arith.truncf %25 : vector<2x8x32xf32> to vector<2x8x32xbf16>
    %27 = vector.extract_strided_slice %20 {offsets = [0, 0, 0], sizes = [2, 8, 8], strides = [1, 1, 1]} : vector<2x8x32xbf16> to vector<2x8x8xbf16>
    %28 = vector.extract_strided_slice %23 {offsets = [0, 0, 0], sizes = [2, 8, 8], strides = [1, 1, 1]} : vector<2x8x32xbf16> to vector<2x8x8xbf16>
    "tpu.trace_start"() <{level = 10 : i32, message = "bqd,bkd->bqk"}> : () -> ()
    %cst_12 = arith.constant dense<0.000000e+00> : vector<2x8x8xf32>
    %29 = tpu.matmul %27, %28, %cst_12 {dimension_numbers = #tpu.dot_dimension_numbers<[2], [2], [1], [1], [0, 0, 0, 1, 1, 1], [0], [0]>} : vector<2x8x8xbf16>, vector<2x8x8xbf16>, vector<2x8x8xf32> -> vector<2x8x8xf32>
    "tpu.trace_stop"() : () -> ()
    %cst_13 = arith.constant 0.353553385 : f32
    %30 = vector.broadcast %cst_13 : f32 to vector<2x8x8xf32>
    %31 = arith.mulf %29, %30 : vector<2x8x8xf32>
    %cst_14 = arith.constant dense<0xFF800000> : vector<2x8xf32>
    %32 = vector.multi_reduction <maximumf>, %31, %cst_14 [2] : vector<2x8x8xf32> to vector<2x8xf32>
    %33 = vector.shape_cast %32 : vector<2x8xf32> to vector<2x8x1xf32>
    %34 = vector.broadcast %33 : vector<2x8x1xf32> to vector<2x8x8xf32>
    %35 = arith.subf %31, %34 : vector<2x8x8xf32>
    %36 = math.exp %35 : vector<2x8x8xf32>
    %cst_15 = arith.constant dense<0.000000e+00> : vector<2x8xf32>
    %37 = vector.multi_reduction <add>, %36, %cst_15 [2] : vector<2x8x8xf32> to vector<2x8xf32>
    %38 = vector.shape_cast %37 : vector<2x8xf32> to vector<2x8x1xf32>
    %39 = tpu.reciprocal %38 {approx = true} : vector<2x8x1xf32> -> vector<2x8x1xf32>
    %40 = vector.broadcast %39 : vector<2x8x1xf32> to vector<2x8x8xf32>
    %41 = arith.mulf %36, %40 : vector<2x8x8xf32>
    %42 = arith.truncf %41 : vector<2x8x8xf32> to vector<2x8x8xbf16>
    %43 = vector.extract_strided_slice %26 {offsets = [0, 0, 0], sizes = [2, 8, 8], strides = [1, 1, 1]} : vector<2x8x32xbf16> to vector<2x8x8xbf16>
    "tpu.trace_start"() <{level = 10 : i32, message = "bqk,bkd->bqd"}> : () -> ()
    %cst_16 = arith.constant dense<0.000000e+00> : vector<2x8x8xf32>
    %44 = tpu.matmul %42, %43, %cst_16 {dimension_numbers = #tpu.dot_dimension_numbers<[2], [1], [1], [2], [0, 0, 0, 1, 1, 2], [0], [0]>} : vector<2x8x8xbf16>, vector<2x8x8xbf16>, vector<2x8x8xf32> -> vector<2x8x8xf32>
    "tpu.trace_stop"() : () -> ()
    %45 = vector.shape_cast %44 : vector<2x8x8xf32> to vector<16x8xf32>
    %46 = vector.extract_strided_slice %20 {offsets = [0, 0, 8], sizes = [2, 8, 8], strides = [1, 1, 1]} : vector<2x8x32xbf16> to vector<2x8x8xbf16>
    %47 = vector.extract_strided_slice %23 {offsets = [0, 0, 8], sizes = [2, 8, 8], strides = [1, 1, 1]} : vector<2x8x32xbf16> to vector<2x8x8xbf16>
    "tpu.trace_start"() <{level = 10 : i32, message = "bqd,bkd->bqk"}> : () -> ()
    %cst_17 = arith.constant dense<0.000000e+00> : vector<2x8x8xf32>
    %48 = tpu.matmul %46, %47, %cst_17 {dimension_numbers = #tpu.dot_dimension_numbers<[2], [2], [1], [1], [0, 0, 0, 1, 1, 1], [0], [0]>} : vector<2x8x8xbf16>, vector<2x8x8xbf16>, vector<2x8x8xf32> -> vector<2x8x8xf32>
    "tpu.trace_stop"() : () -> ()
    %cst_18 = arith.constant 0.353553385 : f32
    %49 = vector.broadcast %cst_18 : f32 to vector<2x8x8xf32>
    %50 = arith.mulf %48, %49 : vector<2x8x8xf32>
    %cst_19 = arith.constant dense<0xFF800000> : vector<2x8xf32>
    %51 = vector.multi_reduction <maximumf>, %50, %cst_19 [2] : vector<2x8x8xf32> to vector<2x8xf32>
    %52 = vector.shape_cast %51 : vector<2x8xf32> to vector<2x8x1xf32>
    %53 = vector.broadcast %52 : vector<2x8x1xf32> to vector<2x8x8xf32>
    %54 = arith.subf %50, %53 : vector<2x8x8xf32>
    %55 = math.exp %54 : vector<2x8x8xf32>
    %cst_20 = arith.constant dense<0.000000e+00> : vector<2x8xf32>
    %56 = vector.multi_reduction <add>, %55, %cst_20 [2] : vector<2x8x8xf32> to vector<2x8xf32>
    %57 = vector.shape_cast %56 : vector<2x8xf32> to vector<2x8x1xf32>
    %58 = tpu.reciprocal %57 {approx = true} : vector<2x8x1xf32> -> vector<2x8x1xf32>
    %59 = vector.broadcast %58 : vector<2x8x1xf32> to vector<2x8x8xf32>
    %60 = arith.mulf %55, %59 : vector<2x8x8xf32>
    %61 = arith.truncf %60 : vector<2x8x8xf32> to vector<2x8x8xbf16>
    %62 = vector.extract_strided_slice %26 {offsets = [0, 0, 8], sizes = [2, 8, 8], strides = [1, 1, 1]} : vector<2x8x32xbf16> to vector<2x8x8xbf16>
    "tpu.trace_start"() <{level = 10 : i32, message = "bqk,bkd->bqd"}> : () -> ()
    %cst_21 = arith.constant dense<0.000000e+00> : vector<2x8x8xf32>
    %63 = tpu.matmul %61, %62, %cst_21 {dimension_numbers = #tpu.dot_dimension_numbers<[2], [1], [1], [2], [0, 0, 0, 1, 1, 2], [0], [0]>} : vector<2x8x8xbf16>, vector<2x8x8xbf16>, vector<2x8x8xf32> -> vector<2x8x8xf32>
    "tpu.trace_stop"() : () -> ()
    %64 = vector.shape_cast %63 : vector<2x8x8xf32> to vector<16x8xf32>
    %65 = vector.extract_strided_slice %20 {offsets = [0, 0, 16], sizes = [2, 8, 8], strides = [1, 1, 1]} : vector<2x8x32xbf16> to vector<2x8x8xbf16>
    %66 = vector.extract_strided_slice %23 {offsets = [0, 0, 16], sizes = [2, 8, 8], strides = [1, 1, 1]} : vector<2x8x32xbf16> to vector<2x8x8xbf16>
    "tpu.trace_start"() <{level = 10 : i32, message = "bqd,bkd->bqk"}> : () -> ()
    %cst_22 = arith.constant dense<0.000000e+00> : vector<2x8x8xf32>
    %67 = tpu.matmul %65, %66, %cst_22 {dimension_numbers = #tpu.dot_dimension_numbers<[2], [2], [1], [1], [0, 0, 0, 1, 1, 1], [0], [0]>} : vector<2x8x8xbf16>, vector<2x8x8xbf16>, vector<2x8x8xf32> -> vector<2x8x8xf32>
    "tpu.trace_stop"() : () -> ()
    %cst_23 = arith.constant 0.353553385 : f32
    %68 = vector.broadcast %cst_23 : f32 to vector<2x8x8xf32>
    %69 = arith.mulf %67, %68 : vector<2x8x8xf32>
    %cst_24 = arith.constant dense<0xFF800000> : vector<2x8xf32>
    %70 = vector.multi_reduction <maximumf>, %69, %cst_24 [2] : vector<2x8x8xf32> to vector<2x8xf32>
    %71 = vector.shape_cast %70 : vector<2x8xf32> to vector<2x8x1xf32>
    %72 = vector.broadcast %71 : vector<2x8x1xf32> to vector<2x8x8xf32>
    %73 = arith.subf %69, %72 : vector<2x8x8xf32>
    %74 = math.exp %73 : vector<2x8x8xf32>
    %cst_25 = arith.constant dense<0.000000e+00> : vector<2x8xf32>
    %75 = vector.multi_reduction <add>, %74, %cst_25 [2] : vector<2x8x8xf32> to vector<2x8xf32>
    %76 = vector.shape_cast %75 : vector<2x8xf32> to vector<2x8x1xf32>
    %77 = tpu.reciprocal %76 {approx = true} : vector<2x8x1xf32> -> vector<2x8x1xf32>
    %78 = vector.broadcast %77 : vector<2x8x1xf32> to vector<2x8x8xf32>
    %79 = arith.mulf %74, %78 : vector<2x8x8xf32>
    %80 = arith.truncf %79 : vector<2x8x8xf32> to vector<2x8x8xbf16>
    %81 = vector.extract_strided_slice %26 {offsets = [0, 0, 16], sizes = [2, 8, 8], strides = [1, 1, 1]} : vector<2x8x32xbf16> to vector<2x8x8xbf16>
    "tpu.trace_start"() <{level = 10 : i32, message = "bqk,bkd->bqd"}> : () -> ()
    %cst_26 = arith.constant dense<0.000000e+00> : vector<2x8x8xf32>
    %82 = tpu.matmul %80, %81, %cst_26 {dimension_numbers = #tpu.dot_dimension_numbers<[2], [1], [1], [2], [0, 0, 0, 1, 1, 2], [0], [0]>} : vector<2x8x8xbf16>, vector<2x8x8xbf16>, vector<2x8x8xf32> -> vector<2x8x8xf32>
    "tpu.trace_stop"() : () -> ()
    %83 = vector.shape_cast %82 : vector<2x8x8xf32> to vector<16x8xf32>
    %84 = vector.extract_strided_slice %20 {offsets = [0, 0, 24], sizes = [2, 8, 8], strides = [1, 1, 1]} : vector<2x8x32xbf16> to vector<2x8x8xbf16>
    %85 = vector.extract_strided_slice %23 {offsets = [0, 0, 24], sizes = [2, 8, 8], strides = [1, 1, 1]} : vector<2x8x32xbf16> to vector<2x8x8xbf16>
    "tpu.trace_start"() <{level = 10 : i32, message = "bqd,bkd->bqk"}> : () -> ()
    %cst_27 = arith.constant dense<0.000000e+00> : vector<2x8x8xf32>
    %86 = tpu.matmul %84, %85, %cst_27 {dimension_numbers = #tpu.dot_dimension_numbers<[2], [2], [1], [1], [0, 0, 0, 1, 1, 1], [0], [0]>} : vector<2x8x8xbf16>, vector<2x8x8xbf16>, vector<2x8x8xf32> -> vector<2x8x8xf32>
    "tpu.trace_stop"() : () -> ()
    %cst_28 = arith.constant 0.353553385 : f32
    %87 = vector.broadcast %cst_28 : f32 to vector<2x8x8xf32>
    %88 = arith.mulf %86, %87 : vector<2x8x8xf32>
    %cst_29 = arith.constant dense<0xFF800000> : vector<2x8xf32>
    %89 = vector.multi_reduction <maximumf>, %88, %cst_29 [2] : vector<2x8x8xf32> to vector<2x8xf32>
    %90 = vector.shape_cast %89 : vector<2x8xf32> to vector<2x8x1xf32>
    %91 = vector.broadcast %90 : vector<2x8x1xf32> to vector<2x8x8xf32>
    %92 = arith.subf %88, %91 : vector<2x8x8xf32>
    %93 = math.exp %92 : vector<2x8x8xf32>
    %cst_30 = arith.constant dense<0.000000e+00> : vector<2x8xf32>
    %94 = vector.multi_reduction <add>, %93, %cst_30 [2] : vector<2x8x8xf32> to vector<2x8xf32>
    %95 = vector.shape_cast %94 : vector<2x8xf32> to vector<2x8x1xf32>
    %96 = tpu.reciprocal %95 {approx = true} : vector<2x8x1xf32> -> vector<2x8x1xf32>
    %97 = vector.broadcast %96 : vector<2x8x1xf32> to vector<2x8x8xf32>
    %98 = arith.mulf %93, %97 : vector<2x8x8xf32>
    %99 = arith.truncf %98 : vector<2x8x8xf32> to vector<2x8x8xbf16>
    %100 = vector.extract_strided_slice %26 {offsets = [0, 0, 24], sizes = [2, 8, 8], strides = [1, 1, 1]} : vector<2x8x32xbf16> to vector<2x8x8xbf16>
    "tpu.trace_start"() <{level = 10 : i32, message = "bqk,bkd->bqd"}> : () -> ()
    %cst_31 = arith.constant dense<0.000000e+00> : vector<2x8x8xf32>
    %101 = tpu.matmul %99, %100, %cst_31 {dimension_numbers = #tpu.dot_dimension_numbers<[2], [1], [1], [2], [0, 0, 0, 1, 1, 2], [0], [0]>} : vector<2x8x8xbf16>, vector<2x8x8xbf16>, vector<2x8x8xf32> -> vector<2x8x8xf32>
    "tpu.trace_stop"() : () -> ()
    %102 = vector.shape_cast %101 : vector<2x8x8xf32> to vector<16x8xf32>
    %103 = tpu.concatenate %45, %64, %83, %102 in 1 : vector<16x8xf32>, vector<16x8xf32>, vector<16x8xf32>, vector<16x8xf32> -> vector<16x32xf32>
    %104 = arith.truncf %103 : vector<16x32xf32> to vector<16x32xbf16>
    %c0_32 = arith.constant 0 : index
    %c0_33 = arith.constant 0 : index
    %c0_34 = arith.constant 0 : index
    %105 = vector.load %arg6[%c0_32, %c0_33, %c0_34] : memref<2x32x32xbf16, #tpu.memory_space<vmem>>, vector<1x32x32xbf16>
    %106 = vector.shape_cast %105 : vector<1x32x32xbf16> to vector<32x32xbf16>
    %cst_35 = arith.constant dense<0.000000e+00> : vector<16x32xf32>
    %107 = tpu.matmul %104, %106, %cst_35 {dimension_numbers = #tpu.dot_dimension_numbers<[1], [0], [0], [1], [0, 0, 1, 1], [], []>} : vector<16x32xbf16>, vector<32x32xbf16>, vector<16x32xf32> -> vector<16x32xf32>
    %c0_36 = arith.constant 0 : index
    %c0_37 = arith.constant 0 : index
    %c0_38 = arith.constant 0 : index
    %108 = vector.load %arg7[%c0_36, %c0_37, %c0_38] : memref<2x1x32xf32, #tpu.memory_space<vmem>>, vector<1x1x32xf32>
    %109 = vector.shape_cast %108 : vector<1x1x32xf32> to vector<1x32xf32>
    %110 = vector.broadcast %109 : vector<1x32xf32> to vector<16x32xf32>
    %111 = arith.addf %107, %110 : vector<16x32xf32>
    %112 = arith.addf %9, %111 : vector<16x32xf32>
    %c0_39 = arith.constant 0 : index
    %c0_40 = arith.constant 0 : index
    %c0_41 = arith.constant 0 : index
    %113 = vector.load %arg12[%c0_39, %c0_40, %c0_41] : memref<2x1x32xf32, #tpu.memory_space<vmem>>, vector<1x1x32xf32>
    %114 = vector.shape_cast %113 : vector<1x1x32xf32> to vector<1x32xf32>
    %c0_42 = arith.constant 0 : index
    %c0_43 = arith.constant 0 : index
    %c0_44 = arith.constant 0 : index
    %115 = vector.load %arg13[%c0_42, %c0_43, %c0_44] : memref<2x1x32xf32, #tpu.memory_space<vmem>>, vector<1x1x32xf32>
    %116 = vector.shape_cast %115 : vector<1x1x32xf32> to vector<1x32xf32>
    %cst_45 = arith.constant dense<0.000000e+00> : vector<16xf32>
    %117 = vector.multi_reduction <add>, %112, %cst_45 [1] : vector<16x32xf32> to vector<16xf32>
    %118 = vector.shape_cast %117 : vector<16xf32> to vector<16x1xf32>
    %cst_46 = arith.constant 3.200000e+01 : f32
    %119 = vector.broadcast %cst_46 : f32 to vector<16x1xf32>
    %120 = arith.divf %118, %119 : vector<16x1xf32>
    %121 = vector.broadcast %120 : vector<16x1xf32> to vector<16x32xf32>
    %122 = arith.subf %112, %121 : vector<16x32xf32>
    %123 = arith.mulf %122, %122 : vector<16x32xf32>
    %cst_47 = arith.constant dense<0.000000e+00> : vector<16xf32>
    %124 = vector.multi_reduction <add>, %123, %cst_47 [1] : vector<16x32xf32> to vector<16xf32>
    %125 = vector.shape_cast %124 : vector<16xf32> to vector<16x1xf32>
    %cst_48 = arith.constant 3.200000e+01 : f32
    %126 = vector.broadcast %cst_48 : f32 to vector<16x1xf32>
    %127 = arith.divf %125, %126 : vector<16x1xf32>
    %128 = vector.broadcast %120 : vector<16x1xf32> to vector<16x32xf32>
    %129 = arith.subf %112, %128 : vector<16x32xf32>
    %cst_49 = arith.constant 9.99999974E-6 : f32
    %130 = vector.broadcast %cst_49 : f32 to vector<16x1xf32>
    %131 = arith.addf %127, %130 : vector<16x1xf32>
    %132 = math.rsqrt %131 : vector<16x1xf32>
    %133 = vector.broadcast %132 : vector<16x1xf32> to vector<16x32xf32>
    %134 = arith.mulf %129, %133 : vector<16x32xf32>
    %135 = vector.broadcast %114 : vector<1x32xf32> to vector<16x32xf32>
    %136 = arith.mulf %134, %135 : vector<16x32xf32>
    %137 = vector.broadcast %116 : vector<1x32xf32> to vector<16x32xf32>
    %138 = arith.addf %136, %137 : vector<16x32xf32>
    %139 = arith.truncf %138 : vector<16x32xf32> to vector<16x32xbf16>
    %c0_50 = arith.constant 0 : index
    %c0_51 = arith.constant 0 : index
    %c0_52 = arith.constant 0 : index
    %140 = vector.load %arg8[%c0_50, %c0_51, %c0_52] : memref<2x32x128xbf16, #tpu.memory_space<vmem>>, vector<1x32x128xbf16>
    %141 = vector.shape_cast %140 : vector<1x32x128xbf16> to vector<32x128xbf16>
    %cst_53 = arith.constant dense<0.000000e+00> : vector<16x128xf32>
    %142 = tpu.matmul %139, %141, %cst_53 {dimension_numbers = #tpu.dot_dimension_numbers<[1], [0], [0], [1], [0, 0, 1, 1], [], []>} : vector<16x32xbf16>, vector<32x128xbf16>, vector<16x128xf32> -> vector<16x128xf32>
    %c0_54 = arith.constant 0 : index
    %c0_55 = arith.constant 0 : index
    %c0_56 = arith.constant 0 : index
    %143 = vector.load %arg9[%c0_54, %c0_55, %c0_56] : memref<2x1x128xf32, #tpu.memory_space<vmem>>, vector<1x1x128xf32>
    %144 = vector.shape_cast %143 : vector<1x1x128xf32> to vector<1x128xf32>
    %145 = vector.broadcast %144 : vector<1x128xf32> to vector<16x128xf32>
    %146 = arith.addf %142, %145 : vector<16x128xf32>
    %cst_57 = arith.constant 0.000000e+00 : f32
    %147 = vector.broadcast %cst_57 : f32 to vector<16x128xf32>
    %148 = arith.maximumf %146, %147 : vector<16x128xf32>
    %149 = arith.truncf %148 : vector<16x128xf32> to vector<16x128xbf16>
    %c0_58 = arith.constant 0 : index
    %c0_59 = arith.constant 0 : index
    %c0_60 = arith.constant 0 : index
    %150 = vector.load %arg10[%c0_58, %c0_59, %c0_60] : memref<2x128x32xbf16, #tpu.memory_space<vmem>>, vector<1x128x32xbf16>
    %151 = vector.shape_cast %150 : vector<1x128x32xbf16> to vector<128x32xbf16>
    %cst_61 = arith.constant dense<0.000000e+00> : vector<16x32xf32>
    %152 = tpu.matmul %149, %151, %cst_61 {dimension_numbers = #tpu.dot_dimension_numbers<[1], [0], [0], [1], [0, 0, 1, 1], [], []>} : vector<16x128xbf16>, vector<128x32xbf16>, vector<16x32xf32> -> vector<16x32xf32>
    %c0_62 = arith.constant 0 : index
    %c0_63 = arith.constant 0 : index
    %c0_64 = arith.constant 0 : index
    %153 = vector.load %arg11[%c0_62, %c0_63, %c0_64] : memref<2x1x32xf32, #tpu.memory_space<vmem>>, vector<1x1x32xf32>
    %154 = vector.shape_cast %153 : vector<1x1x32xf32> to vector<1x32xf32>
    %155 = vector.broadcast %154 : vector<1x32xf32> to vector<16x32xf32>
    %156 = arith.addf %152, %155 : vector<16x32xf32>
    %157 = arith.addf %138, %156 : vector<16x32xf32>
    %c0_65 = arith.constant 0 : index
    %c0_66 = arith.constant 0 : index
    %c0_67 = arith.constant 0 : index
    %158 = vector.load %arg14[%c0_65, %c0_66, %c0_67] : memref<2x1x32xf32, #tpu.memory_space<vmem>>, vector<1x1x32xf32>
    %159 = vector.shape_cast %158 : vector<1x1x32xf32> to vector<1x32xf32>
    %c0_68 = arith.constant 0 : index
    %c0_69 = arith.constant 0 : index
    %c0_70 = arith.constant 0 : index
    %160 = vector.load %arg15[%c0_68, %c0_69, %c0_70] : memref<2x1x32xf32, #tpu.memory_space<vmem>>, vector<1x1x32xf32>
    %161 = vector.shape_cast %160 : vector<1x1x32xf32> to vector<1x32xf32>
    %cst_71 = arith.constant dense<0.000000e+00> : vector<16xf32>
    %162 = vector.multi_reduction <add>, %157, %cst_71 [1] : vector<16x32xf32> to vector<16xf32>
    %163 = vector.shape_cast %162 : vector<16xf32> to vector<16x1xf32>
    %cst_72 = arith.constant 3.200000e+01 : f32
    %164 = vector.broadcast %cst_72 : f32 to vector<16x1xf32>
    %165 = arith.divf %163, %164 : vector<16x1xf32>
    %166 = vector.broadcast %165 : vector<16x1xf32> to vector<16x32xf32>
    %167 = arith.subf %157, %166 : vector<16x32xf32>
    %168 = arith.mulf %167, %167 : vector<16x32xf32>
    %cst_73 = arith.constant dense<0.000000e+00> : vector<16xf32>
    %169 = vector.multi_reduction <add>, %168, %cst_73 [1] : vector<16x32xf32> to vector<16xf32>
    %170 = vector.shape_cast %169 : vector<16xf32> to vector<16x1xf32>
    %cst_74 = arith.constant 3.200000e+01 : f32
    %171 = vector.broadcast %cst_74 : f32 to vector<16x1xf32>
    %172 = arith.divf %170, %171 : vector<16x1xf32>
    %173 = vector.broadcast %165 : vector<16x1xf32> to vector<16x32xf32>
    %174 = arith.subf %157, %173 : vector<16x32xf32>
    %cst_75 = arith.constant 9.99999974E-6 : f32
    %175 = vector.broadcast %cst_75 : f32 to vector<16x1xf32>
    %176 = arith.addf %172, %175 : vector<16x1xf32>
    %177 = math.rsqrt %176 : vector<16x1xf32>
    %178 = vector.broadcast %177 : vector<16x1xf32> to vector<16x32xf32>
    %179 = arith.mulf %174, %178 : vector<16x32xf32>
    %180 = vector.broadcast %159 : vector<1x32xf32> to vector<16x32xf32>
    %181 = arith.mulf %179, %180 : vector<16x32xf32>
    %182 = vector.broadcast %161 : vector<1x32xf32> to vector<16x32xf32>
    %183 = arith.addf %181, %182 : vector<16x32xf32>
    %184 = arith.truncf %183 : vector<16x32xf32> to vector<16x32xbf16>
    %c1 = arith.constant 1 : index
    %c0_76 = arith.constant 0 : index
    %c0_77 = arith.constant 0 : index
    %185 = vector.load %arg4[%c1, %c0_76, %c0_77] : memref<2x32x96xbf16, #tpu.memory_space<vmem>>, vector<1x32x96xbf16>
    %186 = vector.shape_cast %185 : vector<1x32x96xbf16> to vector<32x96xbf16>
    %cst_78 = arith.constant dense<0.000000e+00> : vector<16x96xf32>
    %187 = tpu.matmul %184, %186, %cst_78 {dimension_numbers = #tpu.dot_dimension_numbers<[1], [0], [0], [1], [0, 0, 1, 1], [], []>} : vector<16x32xbf16>, vector<32x96xbf16>, vector<16x96xf32> -> vector<16x96xf32>
    %c1_79 = arith.constant 1 : index
    %c0_80 = arith.constant 0 : index
    %c0_81 = arith.constant 0 : index
    %188 = vector.load %arg5[%c1_79, %c0_80, %c0_81] : memref<2x1x96xf32, #tpu.memory_space<vmem>>, vector<1x1x96xf32>
    %189 = vector.shape_cast %188 : vector<1x1x96xf32> to vector<1x96xf32>
    %190 = vector.broadcast %189 : vector<1x96xf32> to vector<16x96xf32>
    %191 = arith.addf %187, %190 : vector<16x96xf32>
    %192 = vector.extract_strided_slice %191 {offsets = [0, 0], sizes = [16, 32], strides = [1, 1]} : vector<16x96xf32> to vector<16x32xf32>
    %193 = vector.shape_cast %192 : vector<16x32xf32> to vector<2x8x32xf32>
    %194 = arith.truncf %193 : vector<2x8x32xf32> to vector<2x8x32xbf16>
    %195 = vector.extract_strided_slice %191 {offsets = [0, 32], sizes = [16, 32], strides = [1, 1]} : vector<16x96xf32> to vector<16x32xf32>
    %196 = vector.shape_cast %195 : vector<16x32xf32> to vector<2x8x32xf32>
    %197 = arith.truncf %196 : vector<2x8x32xf32> to vector<2x8x32xbf16>
    %198 = vector.extract_strided_slice %191 {offsets = [0, 64], sizes = [16, 32], strides = [1, 1]} : vector<16x96xf32> to vector<16x32xf32>
    %199 = vector.shape_cast %198 : vector<16x32xf32> to vector<2x8x32xf32>
    %200 = arith.truncf %199 : vector<2x8x32xf32> to vector<2x8x32xbf16>
    %201 = vector.extract_strided_slice %194 {offsets = [0, 0, 0], sizes = [2, 8, 8], strides = [1, 1, 1]} : vector<2x8x32xbf16> to vector<2x8x8xbf16>
    %202 = vector.extract_strided_slice %197 {offsets = [0, 0, 0], sizes = [2, 8, 8], strides = [1, 1, 1]} : vector<2x8x32xbf16> to vector<2x8x8xbf16>
    "tpu.trace_start"() <{level = 10 : i32, message = "bqd,bkd->bqk"}> : () -> ()
    %cst_82 = arith.constant dense<0.000000e+00> : vector<2x8x8xf32>
    %203 = tpu.matmul %201, %202, %cst_82 {dimension_numbers = #tpu.dot_dimension_numbers<[2], [2], [1], [1], [0, 0, 0, 1, 1, 1], [0], [0]>} : vector<2x8x8xbf16>, vector<2x8x8xbf16>, vector<2x8x8xf32> -> vector<2x8x8xf32>
    "tpu.trace_stop"() : () -> ()
    %cst_83 = arith.constant 0.353553385 : f32
    %204 = vector.broadcast %cst_83 : f32 to vector<2x8x8xf32>
    %205 = arith.mulf %203, %204 : vector<2x8x8xf32>
    %cst_84 = arith.constant dense<0xFF800000> : vector<2x8xf32>
    %206 = vector.multi_reduction <maximumf>, %205, %cst_84 [2] : vector<2x8x8xf32> to vector<2x8xf32>
    %207 = vector.shape_cast %206 : vector<2x8xf32> to vector<2x8x1xf32>
    %208 = vector.broadcast %207 : vector<2x8x1xf32> to vector<2x8x8xf32>
    %209 = arith.subf %205, %208 : vector<2x8x8xf32>
    %210 = math.exp %209 : vector<2x8x8xf32>
    %cst_85 = arith.constant dense<0.000000e+00> : vector<2x8xf32>
    %211 = vector.multi_reduction <add>, %210, %cst_85 [2] : vector<2x8x8xf32> to vector<2x8xf32>
    %212 = vector.shape_cast %211 : vector<2x8xf32> to vector<2x8x1xf32>
    %213 = tpu.reciprocal %212 {approx = true} : vector<2x8x1xf32> -> vector<2x8x1xf32>
    %214 = vector.broadcast %213 : vector<2x8x1xf32> to vector<2x8x8xf32>
    %215 = arith.mulf %210, %214 : vector<2x8x8xf32>
    %216 = arith.truncf %215 : vector<2x8x8xf32> to vector<2x8x8xbf16>
    %217 = vector.extract_strided_slice %200 {offsets = [0, 0, 0], sizes = [2, 8, 8], strides = [1, 1, 1]} : vector<2x8x32xbf16> to vector<2x8x8xbf16>
    "tpu.trace_start"() <{level = 10 : i32, message = "bqk,bkd->bqd"}> : () -> ()
    %cst_86 = arith.constant dense<0.000000e+00> : vector<2x8x8xf32>
    %218 = tpu.matmul %216, %217, %cst_86 {dimension_numbers = #tpu.dot_dimension_numbers<[2], [1], [1], [2], [0, 0, 0, 1, 1, 2], [0], [0]>} : vector<2x8x8xbf16>, vector<2x8x8xbf16>, vector<2x8x8xf32> -> vector<2x8x8xf32>
    "tpu.trace_stop"() : () -> ()
    %219 = vector.shape_cast %218 : vector<2x8x8xf32> to vector<16x8xf32>
    %220 = vector.extract_strided_slice %194 {offsets = [0, 0, 8], sizes = [2, 8, 8], strides = [1, 1, 1]} : vector<2x8x32xbf16> to vector<2x8x8xbf16>
    %221 = vector.extract_strided_slice %197 {offsets = [0, 0, 8], sizes = [2, 8, 8], strides = [1, 1, 1]} : vector<2x8x32xbf16> to vector<2x8x8xbf16>
    "tpu.trace_start"() <{level = 10 : i32, message = "bqd,bkd->bqk"}> : () -> ()
    %cst_87 = arith.constant dense<0.000000e+00> : vector<2x8x8xf32>
    %222 = tpu.matmul %220, %221, %cst_87 {dimension_numbers = #tpu.dot_dimension_numbers<[2], [2], [1], [1], [0, 0, 0, 1, 1, 1], [0], [0]>} : vector<2x8x8xbf16>, vector<2x8x8xbf16>, vector<2x8x8xf32> -> vector<2x8x8xf32>
    "tpu.trace_stop"() : () -> ()
    %cst_88 = arith.constant 0.353553385 : f32
    %223 = vector.broadcast %cst_88 : f32 to vector<2x8x8xf32>
    %224 = arith.mulf %222, %223 : vector<2x8x8xf32>
    %cst_89 = arith.constant dense<0xFF800000> : vector<2x8xf32>
    %225 = vector.multi_reduction <maximumf>, %224, %cst_89 [2] : vector<2x8x8xf32> to vector<2x8xf32>
    %226 = vector.shape_cast %225 : vector<2x8xf32> to vector<2x8x1xf32>
    %227 = vector.broadcast %226 : vector<2x8x1xf32> to vector<2x8x8xf32>
    %228 = arith.subf %224, %227 : vector<2x8x8xf32>
    %229 = math.exp %228 : vector<2x8x8xf32>
    %cst_90 = arith.constant dense<0.000000e+00> : vector<2x8xf32>
    %230 = vector.multi_reduction <add>, %229, %cst_90 [2] : vector<2x8x8xf32> to vector<2x8xf32>
    %231 = vector.shape_cast %230 : vector<2x8xf32> to vector<2x8x1xf32>
    %232 = tpu.reciprocal %231 {approx = true} : vector<2x8x1xf32> -> vector<2x8x1xf32>
    %233 = vector.broadcast %232 : vector<2x8x1xf32> to vector<2x8x8xf32>
    %234 = arith.mulf %229, %233 : vector<2x8x8xf32>
    %235 = arith.truncf %234 : vector<2x8x8xf32> to vector<2x8x8xbf16>
    %236 = vector.extract_strided_slice %200 {offsets = [0, 0, 8], sizes = [2, 8, 8], strides = [1, 1, 1]} : vector<2x8x32xbf16> to vector<2x8x8xbf16>
    "tpu.trace_start"() <{level = 10 : i32, message = "bqk,bkd->bqd"}> : () -> ()
    %cst_91 = arith.constant dense<0.000000e+00> : vector<2x8x8xf32>
    %237 = tpu.matmul %235, %236, %cst_91 {dimension_numbers = #tpu.dot_dimension_numbers<[2], [1], [1], [2], [0, 0, 0, 1, 1, 2], [0], [0]>} : vector<2x8x8xbf16>, vector<2x8x8xbf16>, vector<2x8x8xf32> -> vector<2x8x8xf32>
    "tpu.trace_stop"() : () -> ()
    %238 = vector.shape_cast %237 : vector<2x8x8xf32> to vector<16x8xf32>
    %239 = vector.extract_strided_slice %194 {offsets = [0, 0, 16], sizes = [2, 8, 8], strides = [1, 1, 1]} : vector<2x8x32xbf16> to vector<2x8x8xbf16>
    %240 = vector.extract_strided_slice %197 {offsets = [0, 0, 16], sizes = [2, 8, 8], strides = [1, 1, 1]} : vector<2x8x32xbf16> to vector<2x8x8xbf16>
    "tpu.trace_start"() <{level = 10 : i32, message = "bqd,bkd->bqk"}> : () -> ()
    %cst_92 = arith.constant dense<0.000000e+00> : vector<2x8x8xf32>
    %241 = tpu.matmul %239, %240, %cst_92 {dimension_numbers = #tpu.dot_dimension_numbers<[2], [2], [1], [1], [0, 0, 0, 1, 1, 1], [0], [0]>} : vector<2x8x8xbf16>, vector<2x8x8xbf16>, vector<2x8x8xf32> -> vector<2x8x8xf32>
    "tpu.trace_stop"() : () -> ()
    %cst_93 = arith.constant 0.353553385 : f32
    %242 = vector.broadcast %cst_93 : f32 to vector<2x8x8xf32>
    %243 = arith.mulf %241, %242 : vector<2x8x8xf32>
    %cst_94 = arith.constant dense<0xFF800000> : vector<2x8xf32>
    %244 = vector.multi_reduction <maximumf>, %243, %cst_94 [2] : vector<2x8x8xf32> to vector<2x8xf32>
    %245 = vector.shape_cast %244 : vector<2x8xf32> to vector<2x8x1xf32>
    %246 = vector.broadcast %245 : vector<2x8x1xf32> to vector<2x8x8xf32>
    %247 = arith.subf %243, %246 : vector<2x8x8xf32>
    %248 = math.exp %247 : vector<2x8x8xf32>
    %cst_95 = arith.constant dense<0.000000e+00> : vector<2x8xf32>
    %249 = vector.multi_reduction <add>, %248, %cst_95 [2] : vector<2x8x8xf32> to vector<2x8xf32>
    %250 = vector.shape_cast %249 : vector<2x8xf32> to vector<2x8x1xf32>
    %251 = tpu.reciprocal %250 {approx = true} : vector<2x8x1xf32> -> vector<2x8x1xf32>
    %252 = vector.broadcast %251 : vector<2x8x1xf32> to vector<2x8x8xf32>
    %253 = arith.mulf %248, %252 : vector<2x8x8xf32>
    %254 = arith.truncf %253 : vector<2x8x8xf32> to vector<2x8x8xbf16>
    %255 = vector.extract_strided_slice %200 {offsets = [0, 0, 16], sizes = [2, 8, 8], strides = [1, 1, 1]} : vector<2x8x32xbf16> to vector<2x8x8xbf16>
    "tpu.trace_start"() <{level = 10 : i32, message = "bqk,bkd->bqd"}> : () -> ()
    %cst_96 = arith.constant dense<0.000000e+00> : vector<2x8x8xf32>
    %256 = tpu.matmul %254, %255, %cst_96 {dimension_numbers = #tpu.dot_dimension_numbers<[2], [1], [1], [2], [0, 0, 0, 1, 1, 2], [0], [0]>} : vector<2x8x8xbf16>, vector<2x8x8xbf16>, vector<2x8x8xf32> -> vector<2x8x8xf32>
    "tpu.trace_stop"() : () -> ()
    %257 = vector.shape_cast %256 : vector<2x8x8xf32> to vector<16x8xf32>
    %258 = vector.extract_strided_slice %194 {offsets = [0, 0, 24], sizes = [2, 8, 8], strides = [1, 1, 1]} : vector<2x8x32xbf16> to vector<2x8x8xbf16>
    %259 = vector.extract_strided_slice %197 {offsets = [0, 0, 24], sizes = [2, 8, 8], strides = [1, 1, 1]} : vector<2x8x32xbf16> to vector<2x8x8xbf16>
    "tpu.trace_start"() <{level = 10 : i32, message = "bqd,bkd->bqk"}> : () -> ()
    %cst_97 = arith.constant dense<0.000000e+00> : vector<2x8x8xf32>
    %260 = tpu.matmul %258, %259, %cst_97 {dimension_numbers = #tpu.dot_dimension_numbers<[2], [2], [1], [1], [0, 0, 0, 1, 1, 1], [0], [0]>} : vector<2x8x8xbf16>, vector<2x8x8xbf16>, vector<2x8x8xf32> -> vector<2x8x8xf32>
    "tpu.trace_stop"() : () -> ()
    %cst_98 = arith.constant 0.353553385 : f32
    %261 = vector.broadcast %cst_98 : f32 to vector<2x8x8xf32>
    %262 = arith.mulf %260, %261 : vector<2x8x8xf32>
    %cst_99 = arith.constant dense<0xFF800000> : vector<2x8xf32>
    %263 = vector.multi_reduction <maximumf>, %262, %cst_99 [2] : vector<2x8x8xf32> to vector<2x8xf32>
    %264 = vector.shape_cast %263 : vector<2x8xf32> to vector<2x8x1xf32>
    %265 = vector.broadcast %264 : vector<2x8x1xf32> to vector<2x8x8xf32>
    %266 = arith.subf %262, %265 : vector<2x8x8xf32>
    %267 = math.exp %266 : vector<2x8x8xf32>
    %cst_100 = arith.constant dense<0.000000e+00> : vector<2x8xf32>
    %268 = vector.multi_reduction <add>, %267, %cst_100 [2] : vector<2x8x8xf32> to vector<2x8xf32>
    %269 = vector.shape_cast %268 : vector<2x8xf32> to vector<2x8x1xf32>
    %270 = tpu.reciprocal %269 {approx = true} : vector<2x8x1xf32> -> vector<2x8x1xf32>
    %271 = vector.broadcast %270 : vector<2x8x1xf32> to vector<2x8x8xf32>
    %272 = arith.mulf %267, %271 : vector<2x8x8xf32>
    %273 = arith.truncf %272 : vector<2x8x8xf32> to vector<2x8x8xbf16>
    %274 = vector.extract_strided_slice %200 {offsets = [0, 0, 24], sizes = [2, 8, 8], strides = [1, 1, 1]} : vector<2x8x32xbf16> to vector<2x8x8xbf16>
    "tpu.trace_start"() <{level = 10 : i32, message = "bqk,bkd->bqd"}> : () -> ()
    %cst_101 = arith.constant dense<0.000000e+00> : vector<2x8x8xf32>
    %275 = tpu.matmul %273, %274, %cst_101 {dimension_numbers = #tpu.dot_dimension_numbers<[2], [1], [1], [2], [0, 0, 0, 1, 1, 2], [0], [0]>} : vector<2x8x8xbf16>, vector<2x8x8xbf16>, vector<2x8x8xf32> -> vector<2x8x8xf32>
    "tpu.trace_stop"() : () -> ()
    %276 = vector.shape_cast %275 : vector<2x8x8xf32> to vector<16x8xf32>
    %277 = tpu.concatenate %219, %238, %257, %276 in 1 : vector<16x8xf32>, vector<16x8xf32>, vector<16x8xf32>, vector<16x8xf32> -> vector<16x32xf32>
    %278 = arith.truncf %277 : vector<16x32xf32> to vector<16x32xbf16>
    %c1_102 = arith.constant 1 : index
    %c0_103 = arith.constant 0 : index
    %c0_104 = arith.constant 0 : index
    %279 = vector.load %arg6[%c1_102, %c0_103, %c0_104] : memref<2x32x32xbf16, #tpu.memory_space<vmem>>, vector<1x32x32xbf16>
    %280 = vector.shape_cast %279 : vector<1x32x32xbf16> to vector<32x32xbf16>
    %cst_105 = arith.constant dense<0.000000e+00> : vector<16x32xf32>
    %281 = tpu.matmul %278, %280, %cst_105 {dimension_numbers = #tpu.dot_dimension_numbers<[1], [0], [0], [1], [0, 0, 1, 1], [], []>} : vector<16x32xbf16>, vector<32x32xbf16>, vector<16x32xf32> -> vector<16x32xf32>
    %c1_106 = arith.constant 1 : index
    %c0_107 = arith.constant 0 : index
    %c0_108 = arith.constant 0 : index
    %282 = vector.load %arg7[%c1_106, %c0_107, %c0_108] : memref<2x1x32xf32, #tpu.memory_space<vmem>>, vector<1x1x32xf32>
    %283 = vector.shape_cast %282 : vector<1x1x32xf32> to vector<1x32xf32>
    %284 = vector.broadcast %283 : vector<1x32xf32> to vector<16x32xf32>
    %285 = arith.addf %281, %284 : vector<16x32xf32>
    %286 = arith.addf %183, %285 : vector<16x32xf32>
    %c1_109 = arith.constant 1 : index
    %c0_110 = arith.constant 0 : index
    %c0_111 = arith.constant 0 : index
    %287 = vector.load %arg12[%c1_109, %c0_110, %c0_111] : memref<2x1x32xf32, #tpu.memory_space<vmem>>, vector<1x1x32xf32>
    %288 = vector.shape_cast %287 : vector<1x1x32xf32> to vector<1x32xf32>
    %c1_112 = arith.constant 1 : index
    %c0_113 = arith.constant 0 : index
    %c0_114 = arith.constant 0 : index
    %289 = vector.load %arg13[%c1_112, %c0_113, %c0_114] : memref<2x1x32xf32, #tpu.memory_space<vmem>>, vector<1x1x32xf32>
    %290 = vector.shape_cast %289 : vector<1x1x32xf32> to vector<1x32xf32>
    %cst_115 = arith.constant dense<0.000000e+00> : vector<16xf32>
    %291 = vector.multi_reduction <add>, %286, %cst_115 [1] : vector<16x32xf32> to vector<16xf32>
    %292 = vector.shape_cast %291 : vector<16xf32> to vector<16x1xf32>
    %cst_116 = arith.constant 3.200000e+01 : f32
    %293 = vector.broadcast %cst_116 : f32 to vector<16x1xf32>
    %294 = arith.divf %292, %293 : vector<16x1xf32>
    %295 = vector.broadcast %294 : vector<16x1xf32> to vector<16x32xf32>
    %296 = arith.subf %286, %295 : vector<16x32xf32>
    %297 = arith.mulf %296, %296 : vector<16x32xf32>
    %cst_117 = arith.constant dense<0.000000e+00> : vector<16xf32>
    %298 = vector.multi_reduction <add>, %297, %cst_117 [1] : vector<16x32xf32> to vector<16xf32>
    %299 = vector.shape_cast %298 : vector<16xf32> to vector<16x1xf32>
    %cst_118 = arith.constant 3.200000e+01 : f32
    %300 = vector.broadcast %cst_118 : f32 to vector<16x1xf32>
    %301 = arith.divf %299, %300 : vector<16x1xf32>
    %302 = vector.broadcast %294 : vector<16x1xf32> to vector<16x32xf32>
    %303 = arith.subf %286, %302 : vector<16x32xf32>
    %cst_119 = arith.constant 9.99999974E-6 : f32
    %304 = vector.broadcast %cst_119 : f32 to vector<16x1xf32>
    %305 = arith.addf %301, %304 : vector<16x1xf32>
    %306 = math.rsqrt %305 : vector<16x1xf32>
    %307 = vector.broadcast %306 : vector<16x1xf32> to vector<16x32xf32>
    %308 = arith.mulf %303, %307 : vector<16x32xf32>
    %309 = vector.broadcast %288 : vector<1x32xf32> to vector<16x32xf32>
    %310 = arith.mulf %308, %309 : vector<16x32xf32>
    %311 = vector.broadcast %290 : vector<1x32xf32> to vector<16x32xf32>
    %312 = arith.addf %310, %311 : vector<16x32xf32>
    %313 = arith.truncf %312 : vector<16x32xf32> to vector<16x32xbf16>
    %c1_120 = arith.constant 1 : index
    %c0_121 = arith.constant 0 : index
    %c0_122 = arith.constant 0 : index
    %314 = vector.load %arg8[%c1_120, %c0_121, %c0_122] : memref<2x32x128xbf16, #tpu.memory_space<vmem>>, vector<1x32x128xbf16>
    %315 = vector.shape_cast %314 : vector<1x32x128xbf16> to vector<32x128xbf16>
    %cst_123 = arith.constant dense<0.000000e+00> : vector<16x128xf32>
    %316 = tpu.matmul %313, %315, %cst_123 {dimension_numbers = #tpu.dot_dimension_numbers<[1], [0], [0], [1], [0, 0, 1, 1], [], []>} : vector<16x32xbf16>, vector<32x128xbf16>, vector<16x128xf32> -> vector<16x128xf32>
    %c1_124 = arith.constant 1 : index
    %c0_125 = arith.constant 0 : index
    %c0_126 = arith.constant 0 : index
    %317 = vector.load %arg9[%c1_124, %c0_125, %c0_126] : memref<2x1x128xf32, #tpu.memory_space<vmem>>, vector<1x1x128xf32>
    %318 = vector.shape_cast %317 : vector<1x1x128xf32> to vector<1x128xf32>
    %319 = vector.broadcast %318 : vector<1x128xf32> to vector<16x128xf32>
    %320 = arith.addf %316, %319 : vector<16x128xf32>
    %cst_127 = arith.constant 0.000000e+00 : f32
    %321 = vector.broadcast %cst_127 : f32 to vector<16x128xf32>
    %322 = arith.maximumf %320, %321 : vector<16x128xf32>
    %323 = arith.truncf %322 : vector<16x128xf32> to vector<16x128xbf16>
    %c1_128 = arith.constant 1 : index
    %c0_129 = arith.constant 0 : index
    %c0_130 = arith.constant 0 : index
    %324 = vector.load %arg10[%c1_128, %c0_129, %c0_130] : memref<2x128x32xbf16, #tpu.memory_space<vmem>>, vector<1x128x32xbf16>
    %325 = vector.shape_cast %324 : vector<1x128x32xbf16> to vector<128x32xbf16>
    %cst_131 = arith.constant dense<0.000000e+00> : vector<16x32xf32>
    %326 = tpu.matmul %323, %325, %cst_131 {dimension_numbers = #tpu.dot_dimension_numbers<[1], [0], [0], [1], [0, 0, 1, 1], [], []>} : vector<16x128xbf16>, vector<128x32xbf16>, vector<16x32xf32> -> vector<16x32xf32>
    %c1_132 = arith.constant 1 : index
    %c0_133 = arith.constant 0 : index
    %c0_134 = arith.constant 0 : index
    %327 = vector.load %arg11[%c1_132, %c0_133, %c0_134] : memref<2x1x32xf32, #tpu.memory_space<vmem>>, vector<1x1x32xf32>
    %328 = vector.shape_cast %327 : vector<1x1x32xf32> to vector<1x32xf32>
    %329 = vector.broadcast %328 : vector<1x32xf32> to vector<16x32xf32>
    %330 = arith.addf %326, %329 : vector<16x32xf32>
    %331 = arith.addf %312, %330 : vector<16x32xf32>
    %c1_135 = arith.constant 1 : index
    %c0_136 = arith.constant 0 : index
    %c0_137 = arith.constant 0 : index
    %332 = vector.load %arg14[%c1_135, %c0_136, %c0_137] : memref<2x1x32xf32, #tpu.memory_space<vmem>>, vector<1x1x32xf32>
    %333 = vector.shape_cast %332 : vector<1x1x32xf32> to vector<1x32xf32>
    %c1_138 = arith.constant 1 : index
    %c0_139 = arith.constant 0 : index
    %c0_140 = arith.constant 0 : index
    %334 = vector.load %arg15[%c1_138, %c0_139, %c0_140] : memref<2x1x32xf32, #tpu.memory_space<vmem>>, vector<1x1x32xf32>
    %335 = vector.shape_cast %334 : vector<1x1x32xf32> to vector<1x32xf32>
    %cst_141 = arith.constant dense<0.000000e+00> : vector<16xf32>
    %336 = vector.multi_reduction <add>, %331, %cst_141 [1] : vector<16x32xf32> to vector<16xf32>
    %337 = vector.shape_cast %336 : vector<16xf32> to vector<16x1xf32>
    %cst_142 = arith.constant 3.200000e+01 : f32
    %338 = vector.broadcast %cst_142 : f32 to vector<16x1xf32>
    %339 = arith.divf %337, %338 : vector<16x1xf32>
    %340 = vector.broadcast %339 : vector<16x1xf32> to vector<16x32xf32>
    %341 = arith.subf %331, %340 : vector<16x32xf32>
    %342 = arith.mulf %341, %341 : vector<16x32xf32>
    %cst_143 = arith.constant dense<0.000000e+00> : vector<16xf32>
    %343 = vector.multi_reduction <add>, %342, %cst_143 [1] : vector<16x32xf32> to vector<16xf32>
    %344 = vector.shape_cast %343 : vector<16xf32> to vector<16x1xf32>
    %cst_144 = arith.constant 3.200000e+01 : f32
    %345 = vector.broadcast %cst_144 : f32 to vector<16x1xf32>
    %346 = arith.divf %344, %345 : vector<16x1xf32>
    %347 = vector.broadcast %339 : vector<16x1xf32> to vector<16x32xf32>
    %348 = arith.subf %331, %347 : vector<16x32xf32>
    %cst_145 = arith.constant 9.99999974E-6 : f32
    %349 = vector.broadcast %cst_145 : f32 to vector<16x1xf32>
    %350 = arith.addf %346, %349 : vector<16x1xf32>
    %351 = math.rsqrt %350 : vector<16x1xf32>
    %352 = vector.broadcast %351 : vector<16x1xf32> to vector<16x32xf32>
    %353 = arith.mulf %348, %352 : vector<16x32xf32>
    %354 = vector.broadcast %333 : vector<1x32xf32> to vector<16x32xf32>
    %355 = arith.mulf %353, %354 : vector<16x32xf32>
    %356 = vector.broadcast %335 : vector<1x32xf32> to vector<16x32xf32>
    %357 = arith.addf %355, %356 : vector<16x32xf32>
    %358 = vector.shape_cast %357 : vector<16x32xf32> to vector<2x8x32xf32>
    %359 = vector.extract_strided_slice %358 {offsets = [0, 7, 0], sizes = [2, 1, 32], strides = [1, 1, 1]} : vector<2x8x32xf32> to vector<2x1x32xf32>
    %360 = vector.shape_cast %359 : vector<2x1x32xf32> to vector<2x32xf32>
    %c0_146 = arith.constant 0 : index
    %c0_147 = arith.constant 0 : index
    %361 = vector.load %arg16[%c0_146, %c0_147] : memref<1x32xf32, #tpu.memory_space<vmem>>, vector<1x32xf32>
    %362 = vector.broadcast %361 : vector<1x32xf32> to vector<2x32xf32>
    %363 = arith.mulf %360, %362 : vector<2x32xf32>
    %cst_148 = arith.constant dense<0.000000e+00> : vector<2xf32>
    %364 = vector.multi_reduction <add>, %363, %cst_148 [1] : vector<2x32xf32> to vector<2xf32>
    %365 = vector.shape_cast %364 : vector<2xf32> to vector<2x1xf32>
    %c0_149 = arith.constant 0 : index
    %c0_150 = arith.constant 0 : index
    %366 = vector.load %arg17[%c0_149, %c0_150] : memref<1x1xf32, #tpu.memory_space<vmem>>, vector<1x1xf32>
    %367 = vector.broadcast %366 : vector<1x1xf32> to vector<2x1xf32>
    %368 = arith.addf %365, %367 : vector<2x1xf32>
    %369 = tpu.iota {dimensions = array<i32: 1>} : vector<2x128xi32>
    %370 = tpu.iota {dimensions = array<i32: 0>} : vector<2x128xi32>
    %371 = arith.cmpi eq, %369, %370 : vector<2x128xi32>
    %cst_151 = arith.constant 0.000000e+00 : f32
    %372 = vector.shape_cast %368 : vector<2x1xf32> to vector<2x1xf32>
    %373 = vector.broadcast %372 : vector<2x1xf32> to vector<2x128xf32>
    %374 = vector.broadcast %cst_151 : f32 to vector<2x128xf32>
    %375 = arith.select %371, %373, %374 : vector<2x128xi1>, vector<2x128xf32>
    %cst_152 = arith.constant dense<0.000000e+00> : vector<128xf32>
    %376 = vector.multi_reduction <add>, %375, %cst_152 [0] : vector<2x128xf32> to vector<128xf32>
    %377 = vector.shape_cast %376 : vector<128xf32> to vector<1x128xf32>
    %c0_153 = arith.constant 0 : index
    %c0_154 = arith.constant 0 : index
    %c0_155 = arith.constant 0 : index
    %378 = vector.load %arg18[%c0_153, %c0_154, %c0_155] : memref<1x1x128xf32, #tpu.memory_space<vmem>>, vector<1x1x128xf32>
    %379 = vector.shape_cast %378 : vector<1x1x128xf32> to vector<1x128xf32>
    %380 = vector.shape_cast %377 : vector<1x128xf32> to vector<1x1x128xf32>
    tpu.vector_store %arg18[%c0_153, %c0_154, %c0_155], %380 {strides = array<i32>} : memref<1x1x128xf32, #tpu.memory_space<vmem>>, vector<1x1x128xf32>,
    return
  }
  func.func @transform_0(%arg0: i32) -> (i32, i32, i32) {
    %c0_i32 = arith.constant 0 : i32
    %c0_i32_0 = arith.constant 0 : i32
    %c0_i32_1 = arith.constant 0 : i32
    return %arg0, %c0_i32, %c0_i32_0 : i32, i32, i32
  }
  func.func @transform_1(%arg0: i32) -> (i32, i32) {
    %c0_i32 = arith.constant 0 : i32
    %c0_i32_0 = arith.constant 0 : i32
    %c0_i32_1 = arith.constant 0 : i32
    return %c0_i32, %c0_i32_0 : i32, i32
  }
  func.func @transform_2(%arg0: i32) -> (i32, i32) {
    %c0_i32 = arith.constant 0 : i32
    %c0_i32_0 = arith.constant 0 : i32
    %c0_i32_1 = arith.constant 0 : i32
    return %c0_i32, %c0_i32_0 : i32, i32
  }
  func.func @transform_3(%arg0: i32) -> (i32, i32, i32) {
    %c0_i32 = arith.constant 0 : i32
    %c0_i32_0 = arith.constant 0 : i32
    %c0_i32_1 = arith.constant 0 : i32
    %c0_i32_2 = arith.constant 0 : i32
    return %c0_i32, %c0_i32_0, %c0_i32_1 : i32, i32, i32
  }
  func.func @transform_4(%arg0: i32) -> (i32, i32, i32) {
    %c0_i32 = arith.constant 0 : i32
    %c0_i32_0 = arith.constant 0 : i32
    %c0_i32_1 = arith.constant 0 : i32
    %c0_i32_2 = arith.constant 0 : i32
    return %c0_i32, %c0_i32_0, %c0_i32_1 : i32, i32, i32
  }
  func.func @transform_5(%arg0: i32) -> (i32, i32, i32) {
    %c0_i32 = arith.constant 0 : i32
    %c0_i32_0 = arith.constant 0 : i32
    %c0_i32_1 = arith.constant 0 : i32
    %c0_i32_2 = arith.constant 0 : i32
    return %c0_i32, %c0_i32_0, %c0_i32_1 : i32, i32, i32
  }
  func.func @transform_6(%arg0: i32) -> (i32, i32, i32) {
    %c0_i32 = arith.constant 0 : i32
    %c0_i32_0 = arith.constant 0 : i32
    %c0_i32_1 = arith.constant 0 : i32
    %c0_i32_2 = arith.constant 0 : i32
    return %c0_i32, %c0_i32_0, %c0_i32_1 : i32, i32, i32
  }
  func.func @transform_7(%arg0: i32) -> (i32, i32, i32) {
    %c0_i32 = arith.constant 0 : i32
    %c0_i32_0 = arith.constant 0 : i32
    %c0_i32_1 = arith.constant 0 : i32
    %c0_i32_2 = arith.constant 0 : i32
    return %c0_i32, %c0_i32_0, %c0_i32_1 : i32, i32, i32
  }
  func.func @transform_8(%arg0: i32) -> (i32, i32, i32) {
    %c0_i32 = arith.constant 0 : i32
    %c0_i32_0 = arith.constant 0 : i32
    %c0_i32_1 = arith.constant 0 : i32
    %c0_i32_2 = arith.constant 0 : i32
    return %c0_i32, %c0_i32_0, %c0_i32_1 : i32, i32, i32
  }
  func.func @transform_9(%arg0: i32) -> (i32, i32, i32) {
    %c0_i32 = arith.constant 0 : i32
    %c0_i32_0 = arith.constant 0 : i32
    %c0_i32_1 = arith.constant 0 : i32
    %c0_i32_2 = arith.constant 0 : i32
    return %c0_i32, %c0_i32_0, %c0_i32_1 : i32, i32, i32
  }
  func.func @transform_10(%arg0: i32) -> (i32, i32, i32) {
    %c0_i32 = arith.constant 0 : i32
    %c0_i32_0 = arith.constant 0 : i32
    %c0_i32_1 = arith.constant 0 : i32
    %c0_i32_2 = arith.constant 0 : i32
    return %c0_i32, %c0_i32_0, %c0_i32_1 : i32, i32, i32
  }
  func.func @transform_11(%arg0: i32) -> (i32, i32, i32) {
    %c0_i32 = arith.constant 0 : i32
    %c0_i32_0 = arith.constant 0 : i32
    %c0_i32_1 = arith.constant 0 : i32
    %c0_i32_2 = arith.constant 0 : i32
    return %c0_i32, %c0_i32_0, %c0_i32_1 : i32, i32, i32
  }
  func.func @transform_12(%arg0: i32) -> (i32, i32, i32) {
    %c0_i32 = arith.constant 0 : i32
    %c0_i32_0 = arith.constant 0 : i32
    %c0_i32_1 = arith.constant 0 : i32
    %c0_i32_2 = arith.constant 0 : i32
    return %c0_i32, %c0_i32_0, %c0_i32_1 : i32, i32, i32
  }
  func.func @transform_13(%arg0: i32) -> (i32, i32, i32) {
    %c0_i32 = arith.constant 0 : i32
    %c0_i32_0 = arith.constant 0 : i32
    %c0_i32_1 = arith.constant 0 : i32
    %c0_i32_2 = arith.constant 0 : i32
    return %c0_i32, %c0_i32_0, %c0_i32_1 : i32, i32, i32
  }
  func.func @transform_14(%arg0: i32) -> (i32, i32, i32) {
    %c0_i32 = arith.constant 0 : i32
    %c0_i32_0 = arith.constant 0 : i32
    %c0_i32_1 = arith.constant 0 : i32
    %c0_i32_2 = arith.constant 0 : i32
    return %c0_i32, %c0_i32_0, %c0_i32_1 : i32, i32, i32
  }
  func.func @transform_15(%arg0: i32) -> (i32, i32) {
    %c0_i32 = arith.constant 0 : i32
    %c0_i32_0 = arith.constant 0 : i32
    %c0_i32_1 = arith.constant 0 : i32
    return %c0_i32, %c0_i32_0 : i32, i32
  }
  func.func @transform_16(%arg0: i32) -> (i32, i32) {
    %c0_i32 = arith.constant 0 : i32
    %c0_i32_0 = arith.constant 0 : i32
    %c0_i32_1 = arith.constant 0 : i32
    return %c0_i32, %c0_i32_0 : i32, i32
  }
  func.func @transform_17(%arg0: i32) -> (i32, i32, i32) {
    %c0_i32 = arith.constant 0 : i32
    %c0_i32_0 = arith.constant 0 : i32
    %c0_i32_1 = arith.constant 0 : i32
    return %arg0, %c0_i32, %c0_i32_0 : i32, i32, i32
  }
}

</mosaic_0001>

<bundles_post_ra>
// kernel: tpu_custom_call.1
= control target key start
LH: loop header
LB: loop body
LE: loop exit
PB: predicated region body
PF: predicated region fallthrough
CT: control target
= control target key end

     0   :  { %s4198_s0 = inlined_call_operand.vmem [shape: f32[2,8,32], index: 0, kind: input, shape index: {}]   ;;  %s4199_s1 = inlined_call_operand.vmem [shape: f32[8,32], index: 1, kind: input, shape index: {}]   ;;  %s4200_s2 = inlined_call_operand.vmem [shape: f32[1,32], index: 2, kind: input, shape index: {}]   ;;  %s4201_s3 = inlined_call_operand.vmem [shape: bf16[2,32,96], index: 3, kind: input, shape index: {}]   ;;  %s4202_s4 = inlined_call_operand.vmem [shape: f32[2,1,96], index: 4, kind: input, shape index: {}]   ;;  %s4203_s5 = inlined_call_operand.vmem [shape: bf16[2,32,32], index: 5, kind: input, shape index: {}]   ;;  %s4204_s6 = inlined_call_operand.vmem [shape: f32[2,1,32], index: 6, kind: input, shape index: {}]   ;;  %s4205_s7 = inlined_call_operand.vmem [shape: bf16[2,32,128], index: 7, kind: input, shape index: {}]   ;;  %s4206_s8 = inlined_call_operand.vmem [shape: f32[2,1,128], index: 8, kind: input, shape index: {}]   ;;  %s4207_s9 = inlined_call_operand.vmem [shape: bf16[2,128,32], index: 9, kind: input, shape index: {}]   ;;  %s4208_s10 = inlined_call_operand.vmem [shape: f32[2,1,32], index: 10, kind: input, shape index: {}]   ;;  %s4209_s11 = inlined_call_operand.vmem [shape: f32[2,1,32], index: 11, kind: input, shape index: {}]   ;;  %s4210_s12 = inlined_call_operand.vmem [shape: f32[2,1,32], index: 12, kind: input, shape index: {}]   ;;  %s4211_s13 = inlined_call_operand.vmem [shape: f32[2,1,32], index: 13, kind: input, shape index: {}]   ;;  %s4212_s14 = inlined_call_operand.vmem [shape: f32[2,1,32], index: 14, kind: input, shape index: {}]   ;;  %s4213_s15 = inlined_call_operand.vmem [shape: f32[1,32], index: 15, kind: input, shape index: {}]   ;;  %s4214_s16 = inlined_call_operand.<no memory space> [shape: f32[1,1], index: 16, kind: input, shape index: {}]   ;;  %s4215_s17 = inlined_call_operand.hbm [shape: f32[1,1,128], index: 17, kind: output, shape index: {}]  }
   0x1   :  { %4224 = sst [smem:[#allocation6_spill]] %s4198_s0  ;;  %v22_v0 = vstv %s4214_s16 }
   0x2   :  { %4225 = sst [smem:[#allocation7_spill]] %s4199_s1  ;;  %23 = vst [vmem:[#allocation2] sm:$0x1] %v22_v0 }
   0x3   :  { %v3374_v1 = vld [vmem:[%s4201_s3] sm:$0xff]   ;;  %v3506_v2 = vmov 0.0   ;;  %v3375_v3 = vld [vmem:[%s4201_s3 + $0x8] sm:$0xff]   ;;  %vm3507_vm0 = vmmov 0   ;;  %s4226_s30 = sld [smem:[#allocation6_spill]]  ;;  %s4227_s23 = sld [smem:[#allocation7_spill]] }
   0x4   :  { %3044 = vmatprep.subr.bf16.mxu1 %v3506_v2  ;;  %3070 = vmatprep.subr.bf16.mxu0 %v3506_v2  ;;  %v2823_v6 = vld [vmem:[%s4200_s2] ss:$0 sm:$0xff]  ;;  %vm98_vm1 = vcmask 261120  }
   0x5   :  { %3045 = vmatpush3.bf16.msra.mxu1 %v3374_v1  ;;  %3048 = vmatprep.mubr.msk.bf16.mxu1 %vm3507_vm0, %v3506_v2 }
   0x6   :  { %3046 = vmatprep.subr.bf16.mxu1 %v3506_v2  ;;  %3072 = vmatprep.mubr.msk.bf16.mxu0 %vm3507_vm0, %v3506_v2 }
   0x9   :  { %v60_v4 = vld [vmem:[%s4226_s30] sm:$0xff]  ;;  %v61_v5 = vld [vmem:[%s4226_s30 + $0x8] sm:$0xff]  ;;  %3047 = vmatpush3.bf16.msra.mxu1 %v3375_v3 }
   0xa   :  { %v69_v7 = vmul.f32 %v2823_v6, %v60_v4  ;;  %v70_v8 = vmul.f32 %v2823_v6, %v61_v5  ;;  %v71_v9 = vld [vmem:[%s4227_s23] sm:$0xff]  ;;  %3052 = vmatprep.subr.bf16.mxu1 %v3506_v2 }
   0xc   :  { %v3642_v10 = vadd.f32 %v71_v9, %v69_v7  ;;  %v3644_v11 = vadd.f32 %v71_v9, %v70_v8 }
   0xe   :  { %v74_v12 = vpack.c.bf16 %v3644_v11, %v3642_v10 }
  0x10   :  { %3049 = vmatmul.mubr.msk.bf16.vlgmr.msra.gmra.mrb[0].mxu1 %vm98_vm1, %v74_v12 }
  0x11   :  { %3054 = vmatprep.mubr.msk.bf16.mxu1 %vm3507_vm0, %v3506_v2 }
  0x12   :  { %24 = vsyncpa [#allocation4], 0  ;;  %v2824_v13 = vld [vmem:[%s4202_s4] ss:$0 sm:$0xff]  ;;  %s3508_s25 = smov 96   ;;  %vm148_vm2 = vcmask 64512  }
  0x13   :  { %s3509_s26 = smov 64   ;;  %s3510_s27 = smov 88   ;;  %vm275_vm3 = vcmask 1043456   ;;  %vm1059_vm4 = vcmask 130048   ;;  %vm1062_vm5 = vcmask 195584   ;;  %vm2764_vm6 = vcmask 261127  }
  0x14   :  { %s3511_s28 = smov 120   ;;  %s3512_s29 = smov 56   ;;  %vm2768_vm7 = vcmask 253952   ;;  %vm2794_vm8 = vcmask 1040384   ;;  %vm2800_vm10 = vcmask 1041408  }
  0x15   :  { %s3513_s16 = smov 80   ;;  %s3514_s0 = smov 112  }
  0x16   :  { %s3515_s30 = smov 48   ;;  %s3516_s18 = smov 72  }
  0x17   :  { %s4222_s19 = smov 104   ;;  %s4220_s1 = smov 40  }
  0x18   :  { %s4218_s20 = smov 8   ;;  %s4219_s21 = smov 16  }
  0x19   :  { %s4217_s22 = smov 24  }
  0xe3   :  { %v136_v14 = vpop.f32.mrb[0].mxu1 }
  0xe4   :  { %v137_v15 = vadd.f32 %v2824_v13, %v136_v14  ;;  %v3050_v16 = vpop.f32.mrb[1].mxu1 }
  0xe5   :  { %v139_v17 = vpop.f32.mrb[2].mxu1 }
  0xe6   :  { %v3655_v18 = vpack.c.bf16 %v137_v15, %v137_v15  ;;  %v140_v19 = vadd.f32 %v2824_v13, %v139_v17  ;;  %v3051_v20 = vpop.f32.mrb[3].mxu1 }
  0xe8   :  { %146 = vrot.lane.b32.xlu0 %v3655_v18, %s3508_s25  ;;  %v3659_v21 = vpack.c.bf16 %v140_v19, %v140_v19 }
  0xec   :  { %196 = vrot.lane.b32.xlu0 %v3659_v21, %s3508_s25 }
 0x15a   :  { %v147_v22 = vpop.permute.xlu0 %146 }
 0x15b   :  { %v153_v23 = vsel %vm148_vm2, %v147_v22, 0 }
 0x15c   :  { %3053 = vmatpush3.bf16.xpose.msra.mxu1 %v153_v23 }
 0x15d   :  { %3058 = vmatprep.subr.bf16.mxu1 %v3506_v2 }
 0x15e   :  { %v197_v24 = vpop.permute.xlu0 %196 }
 0x15f   :  { %v202_v25 = vsel %vm148_vm2, %v197_v24, 0 }
 0x163   :  { %3055 = vmatmul.mubr.msk.bf16.vlgmr.msra.gmra.mrb[4].mxu1 %vm148_vm2, %v3655_v18 }
 0x164   :  { %3059 = vmatpush3.bf16.xpose.msra.mxu1 %v202_v25  ;;  %3060 = vmatprep.mubr.msk.bf16.mxu1 %vm3507_vm0, %v3506_v2 }
 0x165   :  { %3064 = vmatprep.subr.bf16.mxu1 %v3506_v2 }
 0x16b   :  { %3061 = vmatmul.mubr.msk.bf16.vlgmr.msra.gmra.mrb[8].mxu1 %vm148_vm2, %v3659_v21 }
 0x16c   :  { %3066 = vmatprep.mubr.msk.bf16.mxu1 %vm3507_vm0, %v3506_v2 }
 0x236   :  { %v189_v26 = vpop.f32.mrb[4].mxu1 }
 0x237   :  { %v244_v27 = vmul.f32 0.35355338, %v189_v26  ;;  %v3056_v28 = vpop.f32.mrb[5].mxu1 }
 0x238   :  { %v192_v29 = vpop.f32.mrb[6].mxu1 }
 0x239   :  { %v3057_v30 = vpop.f32.mrb[7].mxu1  ;;  %v246_v31 = vsel %vm148_vm2, %v244_v27, -inf }
 0x23a   :  { %247 = vmax.xlane.f32.xlu1 %v246_v31 }
 0x23e   :  { %v238_v32 = vpop.f32.mrb[8].mxu1 }
 0x23f   :  { %v245_v33 = vmul.f32 0.35355338, %v238_v32  ;;  %v3062_v34 = vpop.f32.mrb[9].mxu1 }
 0x240   :  { %v241_v35 = vpop.f32.mrb[10].mxu1 }
 0x241   :  { %v3063_v36 = vpop.f32.mrb[11].mxu1  ;;  %v249_v37 = vsel %vm148_vm2, %v245_v33, -inf }
 0x242   :  { %250 = vmax.xlane.f32.xlu1 %v249_v37 }
 0x253   :  { %270 = vrot.lane.b32.xlu1 %v3655_v18, %s3509_s26 }
 0x257   :  { %319 = vrot.lane.b32.xlu1 %v3659_v21, %s3509_s26 }
 0x25b   :  { %369 = vrot.lane.b32.xlu1 %v3655_v18, %s3510_s27 }
 0x2c7   :  { %v248_v38 = vpop.xlane.xlu1 %247 }
 0x2c8   :  { %v252_v39 = vsub.f32 %v244_v27, %v248_v38 }
 0x2ca   :  { %v254_v40 = vmul.f32 1.442695, %v252_v39 }
 0x2cc   :  { %3402 = vpow2.f32 %v254_v40 }
 0x2cf   :  { %v251_v41 = vpop.xlane.xlu1 %250 }
 0x2d0   :  { %v253_v42 = vsub.f32 %v245_v33, %v251_v41 }
 0x2d2   :  { %v256_v43 = vmul.f32 1.442695, %v253_v42 }
 0x2d3   :  { %v271_v44 = vpop.permute.xlu1 %270 }
 0x2d4   :  { %3404 = vpow2.f32 %v256_v43  ;;  %v277_v45 = vsel %vm275_vm3, %v271_v44, 0 }
 0x2d5   :  { %3065 = vmatpush3.bf16.msra.mxu1 %v277_v45 }
 0x2d6   :  { %v3403_v46 = vpop.eup %3402  ;;  %3076 = vmatprep.subr.bf16.mxu1 %v3506_v2 }
 0x2d7   :  { %v320_v47 = vpop.permute.xlu1 %319  ;;  %v258_v48 = vsel %vm148_vm2, %v3403_v46, 0.0 }
 0x2d8   :  { %259 = vadd.xlane.f32.xlu0 %v258_v48  ;;  %v325_v49 = vsel %vm275_vm3, %v320_v47, 0 }
 0x2d9   :  { %3071 = vmatpush3.bf16.msra.mxu0 %v325_v49 }
 0x2da   :  { %3082 = vmatprep.subr.bf16.mxu0 %v3506_v2 }
 0x2db   :  { %v370_v53 = vpop.permute.xlu1 %369 }
 0x2dc   :  { %v375_v58 = vsel %vm148_vm2, %v370_v53, 0 }
 0x2de   :  { %v3405_v50 = vpop.eup %3404 }
 0x2df   :  { %v261_v51 = vsel %vm148_vm2, %v3405_v50, 0.0 }
 0x2e0   :  { %262 = vadd.xlane.f32.xlu1 %v261_v51 }
 0x2ee   :  { %367 = vrot.lane.b32.xlu0 %v3655_v18, %s3511_s28 }
 0x2f1   :  { %419 = vrot.lane.b32.xlu1 %v3659_v21, %s3510_s27 }
 0x2f5   :  { %417 = vrot.lane.b32.xlu1 %v3659_v21, %s3511_s28 }
 0x365   :  { %v260_v52 = vpop.xlane.xlu0 %259 }
 0x366   :  { %3406 = vrcp.f32 %v260_v52 }
 0x369   :  { %v368_v63 = vpop.permute.xlu0 %367 }
 0x36d   :  { %v263_v54 = vpop.xlane.xlu1 %262 }
 0x36e   :  { %3408 = vrcp.f32 %v263_v54 }
 0x370   :  { %v3407_v55 = vpop.eup %3406 }
 0x371   :  { %v266_v56 = vmul.f32 %v3407_v55, %v3403_v46  ;;  %v420_v61 = vpop.permute.xlu1 %419 }
 0x372   :  { %v425_v0 = vsel %vm148_vm2, %v420_v61, 0 }
 0x373   :  { %v268_v57 = vpack.c.bf16 %v266_v56, %v266_v56 }
 0x375   :  { %3067 = vmatmul.mubr.msk.bf16.vlgmr.msra.gmra.mrb[12].mxu1 %vm148_vm2, %v268_v57  ;;  %v418_v1 = vpop.permute.xlu1 %417 }
 0x376   :  { %3077 = vmatpush3.bf16.xpose.msra.mxu1 %v375_v58  ;;  %3078 = vmatprep.mubr.msk.bf16.mxu1 %vm3507_vm0, %v3506_v2 }
 0x377   :  { %3088 = vmatprep.subr.bf16.mxu1 %v3506_v2 }
 0x378   :  { %v3409_v59 = vpop.eup %3408 }
 0x379   :  { %v267_v60 = vmul.f32 %v3409_v59, %v3405_v50 }
 0x37b   :  { %v269_v62 = vpack.c.bf16 %v267_v60, %v267_v60 }
 0x37d   :  { %3073 = vmatmul.mubr.msk.bf16.vlgmr.msra.gmra.mrb[0].mxu0 %vm148_vm2, %v269_v62  ;;  %3079 = vmatmul.mubr.msk.bf16.vlgmr.msra.gmra.mrb[16].mxu1 %vm148_vm2, %v368_v63 }
 0x37e   :  { %3083 = vmatpush3.bf16.xpose.msra.mxu0 %v425_v0  ;;  %3084 = vmatprep.mubr.msk.bf16.mxu0 %vm3507_vm0, %v3506_v2 }
 0x37f   :  { %3094 = vmatprep.subr.bf16.mxu0 %v3506_v2  ;;  %3090 = vmatprep.mubr.msk.bf16.mxu1 %vm3507_vm0, %v3506_v2 }
 0x385   :  { %3085 = vmatmul.mubr.msk.bf16.vlgmr.msra.gmra.mrb[4].mxu0 %vm148_vm2, %v418_v1 }
 0x386   :  { %3096 = vmatprep.mubr.msk.bf16.mxu0 %vm3507_vm0, %v3506_v2 }
 0x448   :  { %v3711_v3 = vpop.f32.mrb[12].mxu1 }
 0x449   :  { %v3068_v4 = vpop.f32.mrb[13].mxu1 }
 0x44a   :  { %v316_v5 = vpop.f32.mrb[14].mxu1 }
 0x44b   :  { %v3069_v6 = vpop.f32.mrb[15].mxu1 }
 0x450   :  { %v3713_v7 = vpop.f32.mrb[0].mxu0  ;;  %v411_v8 = vpop.f32.mrb[16].mxu1 }
 0x451   :  { %v467_v9 = vmul.f32 0.35355338, %v411_v8  ;;  %v3074_v12 = vpop.f32.mrb[1].mxu0  ;;  %v3080_v13 = vpop.f32.mrb[17].mxu1 }
 0x452   :  { %v364_v14 = vpop.f32.mrb[2].mxu0  ;;  %v414_v15 = vpop.f32.mrb[18].mxu1 }
 0x453   :  { %v3075_v16 = vpop.f32.mrb[3].mxu0  ;;  %v3081_v17 = vpop.f32.mrb[19].mxu1  ;;  %v469_v19 = vsel %vm148_vm2, %v467_v9, -inf }
 0x454   :  { %470 = vmax.xlane.f32.xlu1 %v469_v19 }
 0x458   :  { %v461_v20 = vpop.f32.mrb[4].mxu0 }
 0x459   :  { %v468_v22 = vmul.f32 0.35355338, %v461_v20  ;;  %v3086_v23 = vpop.f32.mrb[5].mxu0 }
 0x45a   :  { %v464_v24 = vpop.f32.mrb[6].mxu0 }
 0x45b   :  { %v3087_v25 = vpop.f32.mrb[7].mxu0  ;;  %v472_v26 = vsel %vm148_vm2, %v468_v22, -inf }
 0x45c   :  { %473 = vmax.xlane.f32.xlu0 %v472_v26 }
 0x465   :  { %493 = vrot.lane.b32.xlu1 %v3655_v18, %s3512_s29 }
 0x469   :  { %591 = vrot.lane.b32.xlu1 %v3655_v18, %s3513_s16 }
 0x472   :  { %541 = vrot.lane.b32.xlu0 %v3659_v21, %s3512_s29 }
 0x476   :  { %589 = vrot.lane.b32.xlu0 %v3655_v18, %s3514_s0 }
 0x4e1   :  { %v471_v27 = vpop.xlane.xlu1 %470 }
 0x4e2   :  { %v475_v28 = vsub.f32 %v467_v9, %v471_v27 }
 0x4e4   :  { %v477_v29 = vmul.f32 1.442695, %v475_v28 }
 0x4e5   :  { %v494_v30 = vpop.permute.xlu1 %493 }
 0x4e6   :  { %3410 = vpow2.f32 %v477_v29  ;;  %v499_v31 = vsel %vm275_vm3, %v494_v30, 0 }
 0x4e7   :  { %3089 = vmatpush3.bf16.msra.mxu1 %v499_v31 }
 0x4e8   :  { %3100 = vmatprep.subr.bf16.mxu1 %v3506_v2 }
 0x4e9   :  { %v474_v32 = vpop.xlane.xlu0 %473  ;;  %v592_v41 = vpop.permute.xlu1 %591 }
 0x4ea   :  { %v476_v33 = vsub.f32 %v468_v22, %v474_v32  ;;  %v597_v47 = vsel %vm148_vm2, %v592_v41, 0 }
 0x4ec   :  { %v479_v34 = vmul.f32 1.442695, %v476_v33 }
 0x4ed   :  { %v542_v35 = vpop.permute.xlu0 %541 }
 0x4ee   :  { %3412 = vpow2.f32 %v479_v34  ;;  %v547_v36 = vsel %vm275_vm3, %v542_v35, 0 }
 0x4ef   :  { %3095 = vmatpush3.bf16.msra.mxu0 %v547_v36 }
 0x4f0   :  { %v3411_v37 = vpop.eup %3410  ;;  %3106 = vmatprep.subr.bf16.mxu0 %v3506_v2 }
 0x4f1   :  { %v481_v38 = vsel %vm148_vm2, %v3411_v37, 0.0  ;;  %v590_v52 = vpop.permute.xlu0 %589 }
 0x4f2   :  { %482 = vadd.xlane.f32.xlu1 %v481_v38 }
 0x4f8   :  { %v3413_v39 = vpop.eup %3412 }
 0x4f9   :  { %v484_v40 = vsel %vm148_vm2, %v3413_v39, 0.0 }
 0x4fa   :  { %485 = vadd.xlane.f32.xlu1 %v484_v40 }
 0x50b   :  { %641 = vrot.lane.b32.xlu1 %v3659_v21, %s3513_s16 }
 0x50f   :  { %639 = vrot.lane.b32.xlu1 %v3659_v21, %s3514_s0 }
 0x57f   :  { %v483_v42 = vpop.xlane.xlu1 %482 }
 0x580   :  { %3414 = vrcp.f32 %v483_v42 }
 0x587   :  { %v486_v43 = vpop.xlane.xlu1 %485 }
 0x588   :  { %3416 = vrcp.f32 %v486_v43 }
 0x58a   :  { %v3415_v44 = vpop.eup %3414 }
 0x58b   :  { %v489_v45 = vmul.f32 %v3415_v44, %v3411_v37  ;;  %v642_v50 = vpop.permute.xlu1 %641 }
 0x58c   :  { %v647_v53 = vsel %vm148_vm2, %v642_v50, 0 }
 0x58d   :  { %v491_v46 = vpack.c.bf16 %v489_v45, %v489_v45 }
 0x58f   :  { %3091 = vmatmul.mubr.msk.bf16.vlgmr.msra.gmra.mrb[20].mxu1 %vm148_vm2, %v491_v46  ;;  %v640_v54 = vpop.permute.xlu1 %639 }
 0x590   :  { %3101 = vmatpush3.bf16.xpose.msra.mxu1 %v597_v47  ;;  %3102 = vmatprep.mubr.msk.bf16.mxu1 %vm3507_vm0, %v3506_v2 }
 0x591   :  { %3112 = vmatprep.subr.bf16.mxu1 %v3506_v2 }
 0x592   :  { %v3417_v48 = vpop.eup %3416 }
 0x593   :  { %v490_v49 = vmul.f32 %v3417_v48, %v3413_v39 }
 0x595   :  { %v492_v51 = vpack.c.bf16 %v490_v49, %v490_v49 }
 0x597   :  { %3097 = vmatmul.mubr.msk.bf16.vlgmr.msra.gmra.mrb[8].mxu0 %vm148_vm2, %v492_v51  ;;  %3103 = vmatmul.mubr.msk.bf16.vlgmr.msra.gmra.mrb[24].mxu1 %vm148_vm2, %v590_v52 }
 0x598   :  { %3107 = vmatpush3.bf16.xpose.msra.mxu0 %v647_v53  ;;  %3108 = vmatprep.mubr.msk.bf16.mxu0 %vm3507_vm0, %v3506_v2 }
 0x599   :  { %3118 = vmatprep.subr.bf16.mxu0 %v3506_v2  ;;  %3114 = vmatprep.mubr.msk.bf16.mxu1 %vm3507_vm0, %v3506_v2 }
 0x59f   :  { %3109 = vmatmul.mubr.msk.bf16.vlgmr.msra.gmra.mrb[12].mxu0 %vm148_vm2, %v640_v54 }
 0x5a0   :  { %3120 = vmatprep.mubr.msk.bf16.mxu0 %vm3507_vm0, %v3506_v2 }
 0x662   :  { %v3751_v55 = vpop.f32.mrb[20].mxu1 }
 0x663   :  { %v3092_v56 = vpop.f32.mrb[21].mxu1 }
 0x664   :  { %v538_v57 = vpop.f32.mrb[22].mxu1 }
 0x665   :  { %v3093_v58 = vpop.f32.mrb[23].mxu1 }
 0x66a   :  { %v3753_v59 = vpop.f32.mrb[8].mxu0  ;;  %v633_v60 = vpop.f32.mrb[24].mxu1 }
 0x66b   :  { %v3342_v61 = vpack.i.bf16 %v3753_v59, %v3751_v55  ;;  %v689_v62 = vmul.f32 0.35355338, %v633_v60  ;;  %v3098_v63 = vpop.f32.mrb[9].mxu0  ;;  %v3104_v0 = vpop.f32.mrb[25].mxu1 }
 0x66c   :  { %v586_v1 = vpop.f32.mrb[10].mxu0  ;;  %v636_v4 = vpop.f32.mrb[26].mxu1 }
 0x66d   :  { %v3099_v5 = vpop.f32.mrb[11].mxu0  ;;  %v3105_v6 = vpop.f32.mrb[27].mxu1  ;;  %v691_v8 = vsel %vm148_vm2, %v689_v62, -inf }
 0x66e   :  { %692 = vmax.xlane.f32.xlu0 %v691_v8 }
 0x672   :  { %v683_v9 = vpop.f32.mrb[12].mxu0 }
 0x673   :  { %v690_v12 = vmul.f32 0.35355338, %v683_v9  ;;  %v3110_v13 = vpop.f32.mrb[13].mxu0 }
 0x674   :  { %v686_v14 = vpop.f32.mrb[14].mxu0 }
 0x675   :  { %v3111_v15 = vpop.f32.mrb[15].mxu0  ;;  %v694_v16 = vsel %vm148_vm2, %v690_v12, -inf }
 0x676   :  { %695 = vmax.xlane.f32.xlu1 %v694_v16 }
 0x687   :  { %715 = vrot.lane.b32.xlu1 %v3655_v18, %s3515_s30 }
 0x68b   :  { %813 = vrot.lane.b32.xlu1 %v3655_v18, %s3516_s18 }
 0x68f   :  { %863 = vrot.lane.b32.xlu1 %v3659_v21, %s3516_s18 }
 0x693   :  { %861 = vrot.lane.b32.xlu1 %v3659_v21, %s4222_s19 }
 0x6fb   :  { %v693_v17 = vpop.xlane.xlu0 %692 }
 0x6fc   :  { %v697_v19 = vsub.f32 %v689_v62, %v693_v17 }
 0x6fe   :  { %v699_v20 = vmul.f32 1.442695, %v697_v19 }
 0x700   :  { %3418 = vpow2.f32 %v699_v20 }
 0x703   :  { %v696_v22 = vpop.xlane.xlu1 %695 }
 0x704   :  { %v698_v23 = vsub.f32 %v690_v12, %v696_v22 }
 0x706   :  { %v701_v24 = vmul.f32 1.442695, %v698_v23 }
 0x707   :  { %v716_v25 = vpop.permute.xlu1 %715 }
 0x708   :  { %3420 = vpow2.f32 %v701_v24  ;;  %v721_v26 = vsel %vm275_vm3, %v716_v25, 0 }
 0x709   :  { %3113 = vmatpush3.bf16.msra.mxu1 %v721_v26 }
 0x70a   :  { %v3419_v27 = vpop.eup %3418  ;;  %3124 = vmatprep.subr.bf16.mxu1 %v3506_v2 }
 0x70b   :  { %v703_v28 = vsel %vm148_vm2, %v3419_v27, 0.0  ;;  %v814_v36 = vpop.permute.xlu1 %813 }
 0x70c   :  { %704 = vadd.xlane.f32.xlu0 %v703_v28  ;;  %v819_v39 = vsel %vm148_vm2, %v814_v36, 0 }
 0x70f   :  { %v864_v42 = vpop.permute.xlu1 %863 }
 0x710   :  { %v869_v45 = vsel %vm148_vm2, %v864_v42, 0 }
 0x712   :  { %v3421_v29 = vpop.eup %3420 }
 0x713   :  { %v706_v30 = vsel %vm148_vm2, %v3421_v29, 0.0  ;;  %v862_v46 = vpop.permute.xlu1 %861 }
 0x714   :  { %707 = vadd.xlane.f32.xlu0 %v706_v30 }
 0x72a   :  { %763 = vrot.lane.b32.xlu0 %v3659_v21, %s3515_s30 }
 0x72e   :  { %811 = vrot.lane.b32.xlu0 %v3655_v18, %s4222_s19 }
 0x799   :  { %v705_v31 = vpop.xlane.xlu0 %704 }
 0x79a   :  { %3422 = vrcp.f32 %v705_v31  ;;  %v3376_v31 = vld [vmem:[%s4203_s5] sm:$0xff]  }
 0x7a1   :  { %v708_v32 = vpop.xlane.xlu0 %707 }
 0x7a2   :  { %3424 = vrcp.f32 %v708_v32  ;;  %v3377_v32 = vld [vmem:[%s4203_s5 + $0x8] sm:$0xff]  }
 0x7a4   :  { %v3423_v33 = vpop.eup %3422 }
 0x7a5   :  { %v711_v34 = vmul.f32 %v3423_v33, %v3419_v27  ;;  %v764_v35 = vpop.permute.xlu0 %763 }
 0x7a6   :  { %v769_v37 = vsel %vm275_vm3, %v764_v35, 0 }
 0x7a7   :  { %3119 = vmatpush3.bf16.msra.mxu0 %v769_v37  ;;  %v713_v38 = vpack.c.bf16 %v711_v34, %v711_v34 }
 0x7a8   :  { %3130 = vmatprep.subr.bf16.mxu0 %v3506_v2 }
 0x7a9   :  { %3115 = vmatmul.mubr.msk.bf16.vlgmr.msra.gmra.mrb[28].mxu1 %vm148_vm2, %v713_v38  ;;  %v812_v44 = vpop.permute.xlu0 %811 }
 0x7aa   :  { %3125 = vmatpush3.bf16.xpose.msra.mxu1 %v819_v39  ;;  %3126 = vmatprep.mubr.msk.bf16.mxu1 %vm3507_vm0, %v3506_v2 }
 0x7ab   :  { %3136 = vmatprep.subr.bf16.mxu1 %v3506_v2 }
 0x7ac   :  { %v3425_v40 = vpop.eup %3424 }
 0x7ad   :  { %v712_v41 = vmul.f32 %v3425_v40, %v3421_v29 }
 0x7af   :  { %v714_v43 = vpack.c.bf16 %v712_v41, %v712_v41 }
 0x7b1   :  { %3121 = vmatmul.mubr.msk.bf16.vlgmr.msra.gmra.mrb[16].mxu0 %vm148_vm2, %v714_v43  ;;  %3127 = vmatmul.mubr.msk.bf16.vlgmr.msra.gmra.mrb[32].mxu1 %vm148_vm2, %v812_v44 }
 0x7b2   :  { %3131 = vmatpush3.bf16.xpose.msra.mxu0 %v869_v45  ;;  %3132 = vmatprep.mubr.msk.bf16.mxu0 %vm3507_vm0, %v3506_v2 }
 0x7b3   :  { %3142 = vmatprep.subr.bf16.mxu0 %v3506_v2  ;;  %3138 = vmatprep.mubr.msk.bf16.mxu1 %vm3507_vm0, %v3506_v2 }
 0x7b9   :  { %3133 = vmatmul.mubr.msk.bf16.vlgmr.msra.gmra.mrb[20].mxu0 %vm148_vm2, %v862_v46 }
 0x7ba   :  { %3144 = vmatprep.mubr.msk.bf16.mxu0 %vm3507_vm0, %v3506_v2 }
 0x87c   :  { %v757_v47 = vpop.f32.mrb[28].mxu1 }
 0x87d   :  { %v3116_v48 = vpop.f32.mrb[29].mxu1 }
 0x87e   :  { %v760_v49 = vpop.f32.mrb[30].mxu1 }
 0x87f   :  { %v3117_v50 = vpop.f32.mrb[31].mxu1 }
 0x884   :  { %v805_v51 = vpop.f32.mrb[16].mxu0  ;;  %v855_v52 = vpop.f32.mrb[32].mxu1 }
 0x885   :  { %v3347_v53 = vpack.i.bf16 %v805_v51, %v757_v47  ;;  %v911_v54 = vmul.f32 0.35355338, %v855_v52  ;;  %v3122_v56 = vpop.f32.mrb[17].mxu0  ;;  %v3128_v57 = vpop.f32.mrb[33].mxu1 }
 0x886   :  { %v808_v58 = vpop.f32.mrb[18].mxu0  ;;  %v858_v60 = vpop.f32.mrb[34].mxu1 }
 0x887   :  { %v3123_v62 = vpop.f32.mrb[19].mxu0  ;;  %v3129_v63 = vpop.f32.mrb[35].mxu1  ;;  %v913_v0 = vsel %vm148_vm2, %v911_v54, -inf }
 0x888   :  { %914 = vmax.xlane.f32.xlu0 %v913_v0 }
 0x88c   :  { %v905_v1 = vpop.f32.mrb[20].mxu0 }
 0x88d   :  { %v912_v4 = vmul.f32 0.35355338, %v905_v1  ;;  %v3134_v5 = vpop.f32.mrb[21].mxu0 }
 0x88e   :  { %v908_v6 = vpop.f32.mrb[22].mxu0 }
 0x88f   :  { %v3135_v8 = vpop.f32.mrb[23].mxu0  ;;  %v916_v9 = vsel %vm148_vm2, %v912_v4, -inf }
 0x890   :  { %917 = vmax.xlane.f32.xlu1 %v916_v9 }
 0x8a1   :  { %937 = vrot.lane.b32.xlu1 %v3655_v18, %s4220_s1 }
 0x8a5   :  { %3343 = vrot.lane.b32.xlu1 %v3342_v61, %s4218_s20 }
 0x8a9   :  { %3348 = vrot.lane.b32.xlu1 %v3347_v53, %s4219_s21 }
 0x915   :  { %v915_v12 = vpop.xlane.xlu0 %914 }
 0x916   :  { %v919_v13 = vsub.f32 %v911_v54, %v915_v12 }
 0x918   :  { %v921_v14 = vmul.f32 1.442695, %v919_v13 }
 0x91a   :  { %3426 = vpow2.f32 %v921_v14 }
 0x91d   :  { %v918_v15 = vpop.xlane.xlu1 %917 }
 0x91e   :  { %v920_v16 = vsub.f32 %v912_v4, %v918_v15 }
 0x920   :  { %v923_v17 = vmul.f32 1.442695, %v920_v16 }
 0x921   :  { %v938_v19 = vpop.permute.xlu1 %937 }
 0x922   :  { %3428 = vpow2.f32 %v923_v17  ;;  %v943_v18 = vsel %vm275_vm3, %v938_v19, 0 }
 0x923   :  { %3137 = vmatpush3.bf16.msra.mxu1 %v943_v18 }
 0x924   :  { %v3427_v20 = vpop.eup %3426  ;;  %3148 = vmatprep.subr.bf16.mxu1 %v3506_v2 }
 0x925   :  { %v925_v55 = vsel %vm148_vm2, %v3427_v20, 0.0  ;;  %v3344_v42 = vpop.permute.xlu1 %3343 }
 0x926   :  { %926 = vadd.xlane.f32.xlu0 %v925_v55  ;;  %v3346_v44 = vunpack.i.h.bf16 %v3344_v42  ;;  %v3345_v45 = vunpack.i.l.bf16 %v3344_v42  ;;  %v3380_v55 = vld [vmem:[%s4207_s9] sm:$0xff]   ;;  %v3387_v42 = vld [vmem:[%s4207_s9 + $0x38] sm:$0xff]  }
 0x928   :  { %v1058_v49 = vsel %vm148_vm2, %v3713_v7, %v3346_v44  ;;  %v1057_v50 = vsel %vm148_vm2, %v3711_v3, %v3345_v45  ;;  %v2844_v3 = vld [vmem:[%s4204_s6] ss:$0 sm:$0xff] }
 0x929   :  { %v3349_v43 = vpop.permute.xlu1 %3348 }
 0x92a   :  { %v3351_v46 = vunpack.i.h.bf16 %v3349_v43  ;;  %v3350_v47 = vunpack.i.l.bf16 %v3349_v43  ;;  %v2850_v43 = vld [vmem:[%s4206_s8] ss:$0 sm:$0xff] }
 0x92c   :  { %v3429_v59 = vpop.eup %3428  ;;  %v1061_v53 = vsel %vm1059_vm4, %v1058_v49, %v3351_v46  ;;  %v1060_v54 = vsel %vm1059_vm4, %v1057_v50, %v3350_v47 }
 0x92d   :  { %v928_v61 = vsel %vm148_vm2, %v3429_v59, 0.0 }
 0x92e   :  { %929 = vadd.xlane.f32.xlu0 %v928_v61  ;;  %v3382_v61 = vld [vmem:[%s4207_s9 + $0x10] sm:$0xff]  }
 0x944   :  { %985 = vrot.lane.b32.xlu0 %v3659_v21, %s4220_s1 }
 0x9b3   :  { %v927_v22 = vpop.xlane.xlu0 %926 }
 0x9b4   :  { %3430 = vrcp.f32 %v927_v22  ;;  %v3383_v22 = vld [vmem:[%s4207_s9 + $0x18] sm:$0xff]  }
 0x9bb   :  { %v930_v23 = vpop.xlane.xlu0 %929 }
 0x9bc   :  { %3432 = vrcp.f32 %v930_v23  ;;  %v3384_v23 = vld [vmem:[%s4207_s9 + $0x20] sm:$0xff]  }
 0x9be   :  { %v3431_v24 = vpop.eup %3430 }
 0x9bf   :  { %v933_v25 = vmul.f32 %v3431_v24, %v3427_v20  ;;  %v986_v26 = vpop.permute.xlu0 %985  ;;  %v3379_v20 = vld [vmem:[%s4205_s7 + $0x8] sm:$0xff]  }
 0x9c0   :  { %v991_v27 = vsel %vm275_vm3, %v986_v26, 0  ;;  %v3385_v24 = vld [vmem:[%s4207_s9 + $0x28] sm:$0xff]  }
 0x9c1   :  { %3143 = vmatpush3.bf16.msra.mxu0 %v991_v27  ;;  %v935_v28 = vpack.c.bf16 %v933_v25, %v933_v25 }
 0x9c2   :  { %3156 = vmatprep.subr.bf16.mxu0 %v3506_v2 }
 0x9c3   :  { %3139 = vmatmul.mubr.msk.bf16.vlgmr.msra.gmra.mrb[36].mxu1 %vm148_vm2, %v935_v28 }
 0x9c4   :  { %3152 = vmatprep.mubr.msk.bf16.mxu1 %vm3507_vm0, %v3506_v2  ;;  %3149 = vmatpush3.bf16.msra.mxu1 %v3376_v31  ;;  %v2848_v31 = vld [vmem:[%s4209_s11] ss:$0 sm:$0xff] }
 0x9c5   :  { %3150 = vmatprep.subr.bf16.mxu1 %v3506_v2 }
 0x9c6   :  { %v3433_v29 = vpop.eup %3432 }
 0x9c7   :  { %v934_v21 = vmul.f32 %v3433_v29, %v3429_v59  ;;  %v3381_v59 = vld [vmem:[%s4207_s9 + $0x8] sm:$0xff]  }
 0x9c8   :  { %3151 = vmatpush3.bf16.msra.mxu1 %v3377_v32 }
 0x9c9   :  { %v936_v30 = vpack.c.bf16 %v934_v21, %v934_v21  ;;  %3164 = vmatprep.subr.bf16.mxu1 %v3506_v2 }
 0x9cb   :  { %3145 = vmatmul.mubr.msk.bf16.vlgmr.msra.gmra.mrb[24].mxu0 %vm148_vm2, %v936_v30 }
 0x9cc   :  { %3160 = vmatprep.mubr.msk.bf16.mxu0 %vm3507_vm0, %v3506_v2 }
 0xa96   :  { %v979_v33 = vpop.f32.mrb[36].mxu1 }
 0xa97   :  { %v3140_v34 = vpop.f32.mrb[37].mxu1 }
 0xa98   :  { %v982_v35 = vpop.f32.mrb[38].mxu1 }
 0xa99   :  { %v3141_v36 = vpop.f32.mrb[39].mxu1 }
 0xa9a   :  { %v2849_v36 = vld [vmem:[%s4210_s12] ss:$0 sm:$0xff] }
 0xa9e   :  { %v1027_v37 = vpop.f32.mrb[24].mxu0 }
 0xa9f   :  { %v3352_v38 = vpack.i.bf16 %v1027_v37, %v979_v33  ;;  %v3146_v39 = vpop.f32.mrb[25].mxu0 }
 0xaa0   :  { %v1030_v40 = vpop.f32.mrb[26].mxu0 }
 0xaa1   :  { %v3147_v41 = vpop.f32.mrb[27].mxu0  ;;  %3353 = vrot.lane.b32.xlu0 %v3352_v38, %s4217_s22 }
 0xaa2   :  { %v3386_v41 = vld [vmem:[%s4207_s9 + $0x30] sm:$0xff]  }
 0xb13   :  { %v3354_v48 = vpop.permute.xlu0 %3353 }
 0xb14   :  { %v3356_v51 = vunpack.i.h.bf16 %v3354_v48  ;;  %v3355_v52 = vunpack.i.l.bf16 %v3354_v48 }
 0xb16   :  { %v1064_v56 = vsel %vm1062_vm5, %v1061_v53, %v3356_v51  ;;  %v1063_v57 = vsel %vm1062_vm5, %v1060_v54, %v3355_v52  ;;  %v2854_v53 = vld [vmem:[%s4208_s10] ss:$0 sm:$0xff] }
 0xb17   :  { %v1065_v58 = vpack.c.bf16 %v1064_v56, %v1063_v57 }
 0xb19   :  { %3153 = vmatmul.mubr.msk.bf16.vlgmr.msra.gmra.mrb[40].mxu1 %vm98_vm1, %v1065_v58 }
 0xb1a   :  { %3180 = vmatprep.mubr.msk.bf16.mxu1 %vm3507_vm0, %v3506_v2  ;;  %3165 = vmatpush3.bf16.msra.mxu1 %v3380_v55 }
 0xb1b   :  { %3166 = vmatprep.subr.bf16.mxu1 %v3506_v2 }
 0xb1e   :  { %3167 = vmatpush3.bf16.msra.mxu1 %v3381_v59 }
 0xb1f   :  { %3168 = vmatprep.subr.bf16.mxu1 %v3506_v2 }
 0xb22   :  { %3169 = vmatpush3.bf16.msra.mxu1 %v3382_v61  ;;  %v2863_v61 = vld [vmem:[%s4211_s13] ss:$0 sm:$0xff] }
 0xb23   :  { %3170 = vmatprep.subr.bf16.mxu1 %v3506_v2 }
 0xb26   :  { %3171 = vmatpush3.bf16.msra.mxu1 %v3383_v22 }
 0xb27   :  { %3172 = vmatprep.subr.bf16.mxu1 %v3506_v2 }
 0xb2a   :  { %3173 = vmatpush3.bf16.msra.mxu1 %v3384_v23 }
 0xb2b   :  { %3174 = vmatprep.subr.bf16.mxu1 %v3506_v2 }
 0xb2e   :  { %3175 = vmatpush3.bf16.msra.mxu1 %v3385_v24 }
 0xb2f   :  { %3176 = vmatprep.subr.bf16.mxu1 %v3506_v2 }
 0xb32   :  { %3177 = vmatpush3.bf16.msra.mxu1 %v3386_v41 }
 0xb33   :  { %3178 = vmatprep.subr.bf16.mxu1 %v3506_v2 }
 0xb36   :  { %3179 = vmatpush3.bf16.msra.mxu1 %v3387_v42 }
 0xb37   :  { %3210 = vmatprep.subr.bf16.mxu1 %v3506_v2 }
 0xbec   :  { %v1126_v7 = vpop.f32.mrb[40].mxu1 }
 0xbed   :  { %v1127_v60 = vadd.f32 %v2844_v3, %v1126_v7  ;;  %v3154_v62 = vpop.f32.mrb[41].mxu1 }
 0xbee   :  { %v1129_v63 = vpop.f32.mrb[42].mxu1 }
 0xbef   :  { %v1130_v0 = vadd.f32 %v2844_v3, %v1129_v63  ;;  %v3155_v1 = vpop.f32.mrb[43].mxu1  ;;  %v1133_v4 = vadd.f32 %v1127_v60, %v3642_v10 }
 0xbf1   :  { %v1137_v5 = vsel %vm98_vm1, %v1133_v4, 0.0  ;;  %v1134_v6 = vadd.f32 %v1130_v0, %v3644_v11  ;;  %v3378_v11 = vld [vmem:[%s4205_s7] sm:$0xff]  }
 0xbf2   :  { %1138 = vadd.xlane.f32.xlu1 %v1137_v5  ;;  %3157 = vmatpush3.bf16.msra.mxu0 %v3378_v11 }
 0xbf3   :  { %v1140_v8 = vsel %vm98_vm1, %v1134_v6, 0.0  ;;  %3158 = vmatprep.subr.bf16.mxu0 %v3506_v2 }
 0xbf4   :  { %1141 = vadd.xlane.f32.xlu0 %v1140_v8 }
 0xbf6   :  { %3159 = vmatpush3.bf16.msra.mxu0 %v3379_v20 }
 0xbf7   :  { %3184 = vmatprep.subr.bf16.mxu0 %v3506_v2 }
 0xc7f   :  { %v1139_v9 = vpop.xlane.xlu1 %1138 }
 0xc80   :  { %v1144_v12 = vmul.f32 0.03125, %v1139_v9 }
 0xc81   :  { %v1142_v13 = vpop.xlane.xlu0 %1141 }
 0xc82   :  { %v1146_v14 = vsub.f32 %v1133_v4, %v1144_v12  ;;  %v1145_v15 = vmul.f32 0.03125, %v1142_v13 }
 0xc84   :  { %v1147_v16 = vsub.f32 %v1134_v6, %v1145_v15  ;;  %v1148_v17 = vmul.f32 %v1146_v14, %v1146_v14 }
 0xc86   :  { %v1150_v19 = vsel %vm98_vm1, %v1148_v17, 0.0  ;;  %v1149_v18 = vmul.f32 %v1147_v16, %v1147_v16  ;;  %v3389_v17 = vld [vmem:[%s4201_s3 + $0x18] sm:$0xff]  }
 0xc87   :  { %1151 = vadd.xlane.f32.xlu0 %v1150_v19 }
 0xc88   :  { %v1153_v10 = vsel %vm98_vm1, %v1149_v18, 0.0 }
 0xc89   :  { %1154 = vadd.xlane.f32.xlu1 %v1153_v10 }
 0xd14   :  { %v1152_v25 = vpop.xlane.xlu0 %1151 }
 0xd15   :  { %v1156_v26 = vmul.f32 0.03125, %v1152_v25 }
 0xd16   :  { %v1155_v27 = vpop.xlane.xlu1 %1154 }
 0xd17   :  { %v1158_v28 = vadd.f32 1e-05, %v1156_v26  ;;  %v1157_v29 = vmul.f32 0.03125, %v1155_v27  ;;  %v2864_v26 = vld [vmem:[%s4212_s14] ss:$0 sm:$0xff] }
 0xd19   :  { %3434 = vrsqrt.f32 %v1158_v28  ;;  %v1159_v21 = vadd.f32 1e-05, %v1157_v29 }
 0xd1b   :  { %3436 = vrsqrt.f32 %v1159_v21 }
 0xd23   :  { %v3435_v30 = vpop.eup %3434 }
 0xd24   :  { %v1162_v32 = vmul.f32 %v3435_v30, %v1146_v14  ;;  %v2870_v30 = vld [vmem:[%s4202_s4 + $0x1] ss:$0 sm:$0xff]  ;;  %s4228_s4 = smov 104  }
 0xd25   :  { %v3437_v33 = vpop.eup %3436 }
 0xd26   :  { %v1170_v34 = vmul.f32 %v2848_v31, %v1162_v32  ;;  %v1163_v35 = vmul.f32 %v3437_v33, %v1147_v16  ;;  %v3388_v16 = vld [vmem:[%s4201_s3 + $0x10] sm:$0xff]  }
 0xd28   :  { %v1171_v37 = vmul.f32 %v2848_v31, %v1163_v35  ;;  %v1178_v38 = vadd.f32 %v2849_v36, %v1170_v34 }
 0xd2a   :  { %v1179_v39 = vadd.f32 %v2849_v36, %v1171_v37 }
 0xd2c   :  { %v1180_v40 = vpack.c.bf16 %v1179_v39, %v1178_v38 }
 0xd2e   :  { %3161 = vmatmul.mubr.msk.bf16.vlgmr.msra.gmra.mrb[28].mxu0 %vm98_vm1, %v1180_v40 }
 0xd2f   :  { %3188 = vmatprep.mubr.msk.bf16.mxu0 %vm3507_vm0, %v3506_v2  ;;  %3185 = vmatpush3.bf16.msra.mxu0 %v3388_v16 }
 0xd30   :  { %3186 = vmatprep.subr.bf16.mxu0 %v3506_v2 }
 0xd33   :  { %3187 = vmatpush3.bf16.msra.mxu0 %v3389_v17 }
 0xd34   :  { %3192 = vmatprep.subr.bf16.mxu0 %v3506_v2 }
 0xe01   :  { %v1241_v44 = vpop.f32.mrb[28].mxu0 }
 0xe02   :  { %v1242_v45 = vadd.f32 %v2850_v43, %v1241_v44  ;;  %v3162_v46 = vpop.f32.mrb[29].mxu0 }
 0xe03   :  { %v1244_v47 = vpop.f32.mrb[30].mxu0 }
 0xe04   :  { %v1245_v48 = vadd.f32 %v2850_v43, %v1244_v47  ;;  %v3163_v49 = vpop.f32.mrb[31].mxu0  ;;  %v1248_v50 = vmax.f32 %v1242_v45, 0.0 }
 0xe06   :  { %v1249_v51 = vmax.f32 %v1245_v48, 0.0 }
 0xe08   :  { %v1250_v52 = vpack.c.bf16 %v1249_v51, %v1248_v50 }
 0xe0a   :  { %3181 = vmatmul.mubr.bf16.vlgmr.msra.gmra.mrb[44].mxu1 %v1250_v52 }
 0xe0b   :  { %3212 = vmatprep.mubr.msk.bf16.mxu1 %vm3507_vm0, %v3506_v2 }
 0xedd   :  { %v1356_v54 = vpop.f32.mrb[44].mxu1 }
 0xede   :  { %v1357_v56 = vadd.f32 %v2854_v53, %v1356_v54  ;;  %v3182_v57 = vpop.f32.mrb[45].mxu1 }
 0xedf   :  { %v1359_v58 = vpop.f32.mrb[46].mxu1 }
 0xee0   :  { %v1360_v3 = vadd.f32 %v2854_v53, %v1359_v58  ;;  %v3183_v7 = vpop.f32.mrb[47].mxu1  ;;  %v1363_v60 = vadd.f32 %v1357_v56, %v1178_v38 }
 0xee2   :  { %v1367_v62 = vsel %vm98_vm1, %v1363_v60, 0.0  ;;  %v1364_v63 = vadd.f32 %v1360_v3, %v1179_v39 }
 0xee3   :  { %1368 = vadd.xlane.f32.xlu0 %v1367_v62 }
 0xee4   :  { %v1370_v0 = vsel %vm98_vm1, %v1364_v63, 0.0 }
 0xee5   :  { %1371 = vadd.xlane.f32.xlu1 %v1370_v0 }
 0xf70   :  { %v1369_v1 = vpop.xlane.xlu0 %1368 }
 0xf71   :  { %v1373_v4 = vmul.f32 0.03125, %v1369_v1 }
 0xf72   :  { %v1372_v5 = vpop.xlane.xlu1 %1371 }
 0xf73   :  { %v1375_v6 = vsub.f32 %v1363_v60, %v1373_v4  ;;  %v1374_v8 = vmul.f32 0.03125, %v1372_v5 }
 0xf75   :  { %v1376_v9 = vsub.f32 %v1364_v63, %v1374_v8  ;;  %v1377_v12 = vmul.f32 %v1375_v6, %v1375_v6 }
 0xf77   :  { %v1379_v13 = vsel %vm98_vm1, %v1377_v12, 0.0  ;;  %v1378_v14 = vmul.f32 %v1376_v9, %v1376_v9 }
 0xf78   :  { %1380 = vadd.xlane.f32.xlu0 %v1379_v13 }
 0xf79   :  { %v1382_v15 = vsel %vm98_vm1, %v1378_v14, 0.0 }
 0xf7a   :  { %1383 = vadd.xlane.f32.xlu1 %v1382_v15 }
0x1005   :  { %v1381_v19 = vpop.xlane.xlu0 %1380 }
0x1006   :  { %v1385_v18 = vmul.f32 0.03125, %v1381_v19 }
0x1007   :  { %v1384_v10 = vpop.xlane.xlu1 %1383 }
0x1008   :  { %v1387_v11 = vadd.f32 1e-05, %v1385_v18  ;;  %v1386_v20 = vmul.f32 0.03125, %v1384_v10 }
0x100a   :  { %3438 = vrsqrt.f32 %v1387_v11  ;;  %v1388_v55 = vadd.f32 1e-05, %v1386_v20 }
0x100c   :  { %3440 = vrsqrt.f32 %v1388_v55 }
0x1014   :  { %v3439_v59 = vpop.eup %3438 }
0x1015   :  { %v1391_v22 = vmul.f32 %v3439_v59, %v1375_v6 }
0x1016   :  { %v3441_v23 = vpop.eup %3440 }
0x1017   :  { %v1399_v24 = vmul.f32 %v2863_v61, %v1391_v22  ;;  %v1392_v25 = vmul.f32 %v3441_v23, %v1376_v9 }
0x1019   :  { %v1400_v27 = vmul.f32 %v2863_v61, %v1392_v25  ;;  %v3920_v28 = vadd.f32 %v2864_v26, %v1399_v24 }
0x101b   :  { %v3922_v29 = vadd.f32 %v2864_v26, %v1400_v27 }
0x101d   :  { %v1409_v21 = vpack.c.bf16 %v3922_v29, %v3920_v28 }
0x101f   :  { %3189 = vmatmul.mubr.msk.bf16.vlgmr.msra.gmra.mrb[32].mxu0 %vm98_vm1, %v1409_v21 }
0x1020   :  { %3194 = vmatprep.mubr.msk.bf16.mxu0 %vm3507_vm0, %v3506_v2 }
0x10f2   :  { %v1472_v31 = vpop.f32.mrb[32].mxu0 }
0x10f3   :  { %v1473_v32 = vadd.f32 %v2870_v30, %v1472_v31  ;;  %v3190_v33 = vpop.f32.mrb[33].mxu0 }
0x10f4   :  { %v1475_v34 = vpop.f32.mrb[34].mxu0 }
0x10f5   :  { %v3932_v35 = vpack.c.bf16 %v1473_v32, %v1473_v32  ;;  %v1476_v36 = vadd.f32 %v2870_v30, %v1475_v34  ;;  %v3191_v37 = vpop.f32.mrb[35].mxu0 }
0x10f7   :  { %v3934_v38 = vpack.c.bf16 %v1476_v36, %v1476_v36  ;;  %1482 = vrot.lane.b32.xlu0 %v3932_v35, %s3508_s25 }
0x10f9   :  { %1531 = vrot.lane.b32.xlu1 %v3934_v38, %s3508_s25  ;;  %s4229_s25 = smov 40  }
0x1169   :  { %v1483_v39 = vpop.permute.xlu0 %1482 }
0x116a   :  { %v1488_v40 = vsel %vm148_vm2, %v1483_v39, 0 }
0x116b   :  { %3193 = vmatpush3.bf16.xpose.msra.mxu0 %v1488_v40  ;;  %v1532_v41 = vpop.permute.xlu1 %1531 }
0x116c   :  { %3198 = vmatprep.subr.bf16.mxu0 %v3506_v2  ;;  %v1537_v42 = vsel %vm148_vm2, %v1532_v41, 0 }
0x1172   :  { %3195 = vmatmul.mubr.msk.bf16.vlgmr.msra.gmra.mrb[36].mxu0 %vm148_vm2, %v3932_v35 }
0x1173   :  { %3199 = vmatpush3.bf16.xpose.msra.mxu0 %v1537_v42  ;;  %3200 = vmatprep.mubr.msk.bf16.mxu0 %vm3507_vm0, %v3506_v2 }
0x1174   :  { %3204 = vmatprep.subr.bf16.mxu0 %v3506_v2 }
0x117a   :  { %3201 = vmatmul.mubr.msk.bf16.vlgmr.msra.gmra.mrb[40].mxu0 %vm148_vm2, %v3934_v38 }
0x117b   :  { %3206 = vmatprep.mubr.msk.bf16.mxu0 %vm3507_vm0, %v3506_v2 }
0x1245   :  { %v1524_v43 = vpop.f32.mrb[36].mxu0 }
0x1246   :  { %v1579_v44 = vmul.f32 0.35355338, %v1524_v43  ;;  %v3196_v45 = vpop.f32.mrb[37].mxu0 }
0x1247   :  { %v1527_v46 = vpop.f32.mrb[38].mxu0 }
0x1248   :  { %v3197_v47 = vpop.f32.mrb[39].mxu0  ;;  %v1581_v48 = vsel %vm148_vm2, %v1579_v44, -inf }
0x1249   :  { %1582 = vmax.xlane.f32.xlu1 %v1581_v48 }
0x124d   :  { %v1573_v49 = vpop.f32.mrb[40].mxu0 }
0x124e   :  { %v1580_v50 = vmul.f32 0.35355338, %v1573_v49  ;;  %v3202_v51 = vpop.f32.mrb[41].mxu0 }
0x124f   :  { %v1576_v52 = vpop.f32.mrb[42].mxu0 }
0x1250   :  { %v3203_v53 = vpop.f32.mrb[43].mxu0  ;;  %v1584_v54 = vsel %vm148_vm2, %v1580_v50, -inf }
0x1251   :  { %1585 = vmax.xlane.f32.xlu0 %v1584_v54 }
0x125a   :  { %1653 = vrot.lane.b32.xlu1 %v3934_v38, %s3509_s26 }
0x1267   :  { %1605 = vrot.lane.b32.xlu0 %v3932_v35, %s3509_s26  ;;  %s4230_s26 = smov 16  }
0x12d6   :  { %v1583_v56 = vpop.xlane.xlu1 %1582 }
0x12d7   :  { %v1587_v57 = vsub.f32 %v1579_v44, %v1583_v56 }
0x12d9   :  { %v1589_v58 = vmul.f32 1.442695, %v1587_v57 }
0x12da   :  { %v1654_v3 = vpop.permute.xlu1 %1653 }
0x12db   :  { %3442 = vpow2.f32 %v1589_v58  ;;  %v1659_v7 = vsel %vm275_vm3, %v1654_v3, 0 }
0x12dc   :  { %3211 = vmatpush3.bf16.msra.mxu1 %v1659_v7 }
0x12dd   :  { %3222 = vmatprep.subr.bf16.mxu1 %v3506_v2 }
0x12de   :  { %v1586_v60 = vpop.xlane.xlu0 %1585 }
0x12df   :  { %v1588_v62 = vsub.f32 %v1580_v50, %v1586_v60 }
0x12e1   :  { %v1591_v63 = vmul.f32 1.442695, %v1588_v62 }
0x12e2   :  { %v1606_v0 = vpop.permute.xlu0 %1605 }
0x12e3   :  { %3444 = vpow2.f32 %v1591_v63  ;;  %v1611_v1 = vsel %vm275_vm3, %v1606_v0, 0 }
0x12e4   :  { %3205 = vmatpush3.bf16.msra.mxu0 %v1611_v1 }
0x12e5   :  { %v3443_v4 = vpop.eup %3442  ;;  %3216 = vmatprep.subr.bf16.mxu0 %v3506_v2 }
0x12e6   :  { %v1593_v5 = vsel %vm148_vm2, %v3443_v4, 0.0 }
0x12e7   :  { %1594 = vadd.xlane.f32.xlu0 %v1593_v5 }
0x12ed   :  { %v3445_v6 = vpop.eup %3444 }
0x12ee   :  { %v1596_v8 = vsel %vm148_vm2, %v3445_v6, 0.0 }
0x12ef   :  { %1597 = vadd.xlane.f32.xlu1 %v1596_v8 }
0x12fd   :  { %1753 = vrot.lane.b32.xlu0 %v3934_v38, %s3510_s27 }
0x1300   :  { %1703 = vrot.lane.b32.xlu1 %v3932_v35, %s3510_s27  ;;  %s4231_s27 = smov 8  }
0x1301   :  { %1751 = vrot.lane.b32.xlu0 %v3934_v38, %s3511_s28 }
0x1304   :  { %1701 = vrot.lane.b32.xlu1 %v3932_v35, %s3511_s28 }
0x1374   :  { %v1595_v9 = vpop.xlane.xlu0 %1594 }
0x1375   :  { %3446 = vrcp.f32 %v1595_v9 }
0x1378   :  { %v1754_v10 = vpop.permute.xlu0 %1753 }
0x1379   :  { %v1759_v55 = vsel %vm148_vm2, %v1754_v10, 0 }
0x137c   :  { %v1598_v12 = vpop.xlane.xlu1 %1597  ;;  %v1752_v59 = vpop.permute.xlu0 %1751 }
0x137d   :  { %3448 = vrcp.f32 %v1598_v12 }
0x137f   :  { %v3447_v13 = vpop.eup %3446 }
0x1380   :  { %v1601_v14 = vmul.f32 %v3447_v13, %v3443_v4  ;;  %v1704_v15 = vpop.permute.xlu1 %1703 }
0x1381   :  { %v1709_v17 = vsel %vm148_vm2, %v1704_v15, 0 }
0x1382   :  { %v1603_v16 = vpack.c.bf16 %v1601_v14, %v1601_v14 }
0x1384   :  { %3207 = vmatmul.mubr.msk.bf16.vlgmr.msra.gmra.mrb[44].mxu0 %vm148_vm2, %v1603_v16  ;;  %v1702_v20 = vpop.permute.xlu1 %1701 }
0x1385   :  { %3217 = vmatpush3.bf16.xpose.msra.mxu0 %v1709_v17  ;;  %3218 = vmatprep.mubr.msk.bf16.mxu0 %vm3507_vm0, %v3506_v2 }
0x1386   :  { %3228 = vmatprep.subr.bf16.mxu0 %v3506_v2 }
0x1387   :  { %v3449_v19 = vpop.eup %3448 }
0x1388   :  { %v1602_v18 = vmul.f32 %v3449_v19, %v3445_v6 }
0x138a   :  { %v1604_v11 = vpack.c.bf16 %v1602_v18, %v1602_v18 }
0x138c   :  { %3213 = vmatmul.mubr.msk.bf16.vlgmr.msra.gmra.mrb[48].mxu1 %vm148_vm2, %v1604_v11  ;;  %3219 = vmatmul.mubr.msk.bf16.vlgmr.msra.gmra.mrb[48].mxu0 %vm148_vm2, %v1702_v20 }
0x138d   :  { %3223 = vmatpush3.bf16.xpose.msra.mxu1 %v1759_v55  ;;  %3224 = vmatprep.mubr.msk.bf16.mxu1 %vm3507_vm0, %v3506_v2 }
0x138e   :  { %3234 = vmatprep.subr.bf16.mxu1 %v3506_v2  ;;  %3230 = vmatprep.mubr.msk.bf16.mxu0 %vm3507_vm0, %v3506_v2 }
0x1394   :  { %3225 = vmatmul.mubr.msk.bf16.vlgmr.msra.gmra.mrb[52].mxu1 %vm148_vm2, %v1752_v59 }
0x1395   :  { %3236 = vmatprep.mubr.msk.bf16.mxu1 %vm3507_vm0, %v3506_v2 }
0x1457   :  { %v3988_v61 = vpop.f32.mrb[44].mxu0 }
0x1458   :  { %v3208_v22 = vpop.f32.mrb[45].mxu0 }
0x1459   :  { %v1650_v23 = vpop.f32.mrb[46].mxu0 }
0x145a   :  { %v3209_v24 = vpop.f32.mrb[47].mxu0 }
0x145f   :  { %v3990_v25 = vpop.f32.mrb[48].mxu1  ;;  %v1745_v26 = vpop.f32.mrb[48].mxu0 }
0x1460   :  { %v1801_v27 = vmul.f32 0.35355338, %v1745_v26  ;;  %v3214_v21 = vpop.f32.mrb[49].mxu1  ;;  %v3220_v30 = vpop.f32.mrb[49].mxu0 }
0x1461   :  { %v1698_v31 = vpop.f32.mrb[50].mxu1  ;;  %v1748_v32 = vpop.f32.mrb[50].mxu0 }
0x1462   :  { %v3215_v33 = vpop.f32.mrb[51].mxu1  ;;  %v3221_v34 = vpop.f32.mrb[51].mxu0  ;;  %v1803_v36 = vsel %vm148_vm2, %v1801_v27, -inf }
0x1463   :  { %1804 = vmax.xlane.f32.xlu1 %v1803_v36 }
0x1467   :  { %v1795_v37 = vpop.f32.mrb[52].mxu1 }
0x1468   :  { %v1802_v39 = vmul.f32 0.35355338, %v1795_v37  ;;  %v3226_v40 = vpop.f32.mrb[53].mxu1 }
0x1469   :  { %v1798_v41 = vpop.f32.mrb[54].mxu1 }
0x146a   :  { %v3227_v42 = vpop.f32.mrb[55].mxu1  ;;  %v1806_v43 = vsel %vm148_vm2, %v1802_v39, -inf }
0x146b   :  { %1807 = vmax.xlane.f32.xlu0 %v1806_v43 }
0x1474   :  { %1875 = vrot.lane.b32.xlu1 %v3934_v38, %s3512_s29 }
0x1481   :  { %1827 = vrot.lane.b32.xlu0 %v3932_v35, %s3512_s29 }
0x14f0   :  { %v1805_v44 = vpop.xlane.xlu1 %1804 }
0x14f1   :  { %v1809_v45 = vsub.f32 %v1801_v27, %v1805_v44 }
0x14f3   :  { %v1811_v46 = vmul.f32 1.442695, %v1809_v45 }
0x14f4   :  { %v1876_v47 = vpop.permute.xlu1 %1875 }
0x14f5   :  { %3450 = vpow2.f32 %v1811_v46  ;;  %v1881_v48 = vsel %vm275_vm3, %v1876_v47, 0 }
0x14f6   :  { %3235 = vmatpush3.bf16.msra.mxu1 %v1881_v48 }
0x14f7   :  { %3246 = vmatprep.subr.bf16.mxu1 %v3506_v2 }
0x14f8   :  { %v1808_v49 = vpop.xlane.xlu0 %1807 }
0x14f9   :  { %v1810_v50 = vsub.f32 %v1802_v39, %v1808_v49 }
0x14fb   :  { %v1813_v51 = vmul.f32 1.442695, %v1810_v50 }
0x14fc   :  { %v1828_v52 = vpop.permute.xlu0 %1827 }
0x14fd   :  { %3452 = vpow2.f32 %v1813_v51  ;;  %v1833_v53 = vsel %vm275_vm3, %v1828_v52, 0 }
0x14fe   :  { %3229 = vmatpush3.bf16.msra.mxu0 %v1833_v53 }
0x14ff   :  { %v3451_v54 = vpop.eup %3450  ;;  %3240 = vmatprep.subr.bf16.mxu0 %v3506_v2 }
0x1500   :  { %v1815_v56 = vsel %vm148_vm2, %v3451_v54, 0.0 }
0x1501   :  { %1816 = vadd.xlane.f32.xlu0 %v1815_v56 }
0x1507   :  { %v3453_v57 = vpop.eup %3452 }
0x1508   :  { %v1818_v58 = vsel %vm148_vm2, %v3453_v57, 0.0 }
0x1509   :  { %1819 = vadd.xlane.f32.xlu1 %v1818_v58 }
0x1517   :  { %1975 = vrot.lane.b32.xlu0 %v3934_v38, %s3513_s16 }
0x151a   :  { %1925 = vrot.lane.b32.xlu1 %v3932_v35, %s3513_s16 }
0x151b   :  { %1973 = vrot.lane.b32.xlu0 %v3934_v38, %s3514_s0 }
0x151e   :  { %1923 = vrot.lane.b32.xlu1 %v3932_v35, %s3514_s0 }
0x158e   :  { %v1817_v3 = vpop.xlane.xlu0 %1816 }
0x158f   :  { %3454 = vrcp.f32 %v1817_v3 }
0x1592   :  { %v1976_v6 = vpop.permute.xlu0 %1975 }
0x1593   :  { %v1981_v12 = vsel %vm148_vm2, %v1976_v6, 0 }
0x1596   :  { %v1820_v7 = vpop.xlane.xlu1 %1819  ;;  %v1974_v13 = vpop.permute.xlu0 %1973 }
0x1597   :  { %3456 = vrcp.f32 %v1820_v7 }
0x1599   :  { %v3455_v60 = vpop.eup %3454 }
0x159a   :  { %v1823_v62 = vmul.f32 %v3455_v60, %v3451_v54  ;;  %v1926_v63 = vpop.permute.xlu1 %1925 }
0x159b   :  { %v1931_v1 = vsel %vm148_vm2, %v1926_v63, 0 }
0x159c   :  { %v1825_v0 = vpack.c.bf16 %v1823_v62, %v1823_v62 }
0x159e   :  { %3231 = vmatmul.mubr.msk.bf16.vlgmr.msra.gmra.mrb[52].mxu0 %vm148_vm2, %v1825_v0  ;;  %v1924_v9 = vpop.permute.xlu1 %1923 }
0x159f   :  { %3241 = vmatpush3.bf16.xpose.msra.mxu0 %v1931_v1  ;;  %3242 = vmatprep.mubr.msk.bf16.mxu0 %vm3507_vm0, %v3506_v2 }
0x15a0   :  { %3252 = vmatprep.subr.bf16.mxu0 %v3506_v2 }
0x15a1   :  { %v3457_v4 = vpop.eup %3456 }
0x15a2   :  { %v1824_v5 = vmul.f32 %v3457_v4, %v3453_v57 }
0x15a4   :  { %v1826_v8 = vpack.c.bf16 %v1824_v5, %v1824_v5 }
0x15a6   :  { %3237 = vmatmul.mubr.msk.bf16.vlgmr.msra.gmra.mrb[56].mxu1 %vm148_vm2, %v1826_v8  ;;  %3243 = vmatmul.mubr.msk.bf16.vlgmr.msra.gmra.mrb[56].mxu0 %vm148_vm2, %v1924_v9 }
0x15a7   :  { %3247 = vmatpush3.bf16.xpose.msra.mxu1 %v1981_v12  ;;  %3248 = vmatprep.mubr.msk.bf16.mxu1 %vm3507_vm0, %v3506_v2 }
0x15a8   :  { %3258 = vmatprep.subr.bf16.mxu1 %v3506_v2  ;;  %3254 = vmatprep.mubr.msk.bf16.mxu0 %vm3507_vm0, %v3506_v2 }
0x15ae   :  { %3249 = vmatmul.mubr.msk.bf16.vlgmr.msra.gmra.mrb[60].mxu1 %vm148_vm2, %v1974_v13 }
0x15af   :  { %3260 = vmatprep.mubr.msk.bf16.mxu1 %vm3507_vm0, %v3506_v2 }
0x1671   :  { %v4028_v14 = vpop.f32.mrb[52].mxu0 }
0x1672   :  { %v3232_v15 = vpop.f32.mrb[53].mxu0 }
0x1673   :  { %v1872_v16 = vpop.f32.mrb[54].mxu0 }
0x1674   :  { %v3233_v17 = vpop.f32.mrb[55].mxu0 }
0x1679   :  { %v4030_v19 = vpop.f32.mrb[56].mxu1  ;;  %v1967_v18 = vpop.f32.mrb[56].mxu0 }
0x167a   :  { %v3357_v10 = vpack.i.bf16 %v4030_v19, %v4028_v14  ;;  %v2023_v11 = vmul.f32 0.35355338, %v1967_v18  ;;  %v3238_v20 = vpop.f32.mrb[57].mxu1  ;;  %v3244_v55 = vpop.f32.mrb[57].mxu0 }
0x167b   :  { %v1920_v59 = vpop.f32.mrb[58].mxu1  ;;  %v1970_v22 = vpop.f32.mrb[58].mxu0 }
0x167c   :  { %v3239_v23 = vpop.f32.mrb[59].mxu1  ;;  %v3245_v24 = vpop.f32.mrb[59].mxu0  ;;  %v2025_v26 = vsel %vm148_vm2, %v2023_v11, -inf }
0x167d   :  { %2026 = vmax.xlane.f32.xlu1 %v2025_v26 }
0x1681   :  { %v2017_v27 = vpop.f32.mrb[60].mxu1 }
0x1682   :  { %v2024_v21 = vmul.f32 0.35355338, %v2017_v27  ;;  %v3250_v30 = vpop.f32.mrb[61].mxu1 }
0x1683   :  { %v2020_v31 = vpop.f32.mrb[62].mxu1 }
0x1684   :  { %v3251_v32 = vpop.f32.mrb[63].mxu1  ;;  %v2028_v33 = vsel %vm148_vm2, %v2024_v21, -inf }
0x1685   :  { %2029 = vmax.xlane.f32.xlu0 %v2028_v33 }
0x168e   :  { %2097 = vrot.lane.b32.xlu1 %v3934_v38, %s3515_s30 }
0x169b   :  { %2049 = vrot.lane.b32.xlu0 %v3932_v35, %s3515_s30  ;;  %s4232_s30 = smov 24  }
0x170a   :  { %v2027_v34 = vpop.xlane.xlu1 %2026 }
0x170b   :  { %v2031_v36 = vsub.f32 %v2023_v11, %v2027_v34 }
0x170d   :  { %v2033_v37 = vmul.f32 1.442695, %v2031_v36 }
0x170e   :  { %v2098_v39 = vpop.permute.xlu1 %2097 }
0x170f   :  { %3458 = vpow2.f32 %v2033_v37  ;;  %v2103_v40 = vsel %vm275_vm3, %v2098_v39, 0 }
0x1710   :  { %3259 = vmatpush3.bf16.msra.mxu1 %v2103_v40 }
0x1711   :  { %3270 = vmatprep.subr.bf16.mxu1 %v3506_v2 }
0x1712   :  { %v2030_v41 = vpop.xlane.xlu0 %2029 }
0x1713   :  { %v2032_v42 = vsub.f32 %v2024_v21, %v2030_v41 }
0x1715   :  { %v2035_v43 = vmul.f32 1.442695, %v2032_v42 }
0x1716   :  { %v2050_v44 = vpop.permute.xlu0 %2049 }
0x1717   :  { %3460 = vpow2.f32 %v2035_v43  ;;  %v2055_v45 = vsel %vm275_vm3, %v2050_v44, 0 }
0x1718   :  { %3253 = vmatpush3.bf16.msra.mxu0 %v2055_v45 }
0x1719   :  { %v3459_v46 = vpop.eup %3458  ;;  %3264 = vmatprep.subr.bf16.mxu0 %v3506_v2 }
0x171a   :  { %v2037_v47 = vsel %vm148_vm2, %v3459_v46, 0.0 }
0x171b   :  { %2038 = vadd.xlane.f32.xlu0 %v2037_v47 }
0x1721   :  { %v3461_v48 = vpop.eup %3460 }
0x1722   :  { %v2040_v49 = vsel %vm148_vm2, %v3461_v48, 0.0 }
0x1723   :  { %2041 = vadd.xlane.f32.xlu1 %v2040_v49  ;;  %v3391_v49 = vld [vmem:[%s4203_s5 + $0x18] sm:$0xff]  }
0x1731   :  { %2197 = vrot.lane.b32.xlu0 %v3934_v38, %s3516_s18 }
0x1734   :  { %2147 = vrot.lane.b32.xlu1 %v3932_v35, %s3516_s18 }
0x1735   :  { %2195 = vrot.lane.b32.xlu0 %v3934_v38, %s4228_s4 }
0x1738   :  { %2145 = vrot.lane.b32.xlu1 %v3932_v35, %s4228_s4 }
0x17a8   :  { %v2039_v50 = vpop.xlane.xlu0 %2038 }
0x17a9   :  { %3462 = vrcp.f32 %v2039_v50 }
0x17ac   :  { %v2198_v7 = vpop.permute.xlu0 %2197 }
0x17ad   :  { %v2203_v63 = vsel %vm148_vm2, %v2198_v7, 0 }
0x17b0   :  { %v2042_v51 = vpop.xlane.xlu1 %2041  ;;  %v2196_v0 = vpop.permute.xlu0 %2195 }
0x17b1   :  { %3464 = vrcp.f32 %v2042_v51 }
0x17b3   :  { %v3463_v52 = vpop.eup %3462 }
0x17b4   :  { %v2045_v53 = vmul.f32 %v3463_v52, %v3459_v46  ;;  %v2148_v54 = vpop.permute.xlu1 %2147 }
0x17b5   :  { %v2153_v57 = vsel %vm148_vm2, %v2148_v54, 0 }
0x17b6   :  { %v2047_v56 = vpack.c.bf16 %v2045_v53, %v2045_v53 }
0x17b8   :  { %3255 = vmatmul.mubr.msk.bf16.vlgmr.msra.gmra.mrb[60].mxu0 %vm148_vm2, %v2047_v56  ;;  %v2146_v62 = vpop.permute.xlu1 %2145 }
0x17b9   :  { %3265 = vmatpush3.bf16.xpose.msra.mxu0 %v2153_v57  ;;  %3266 = vmatprep.mubr.msk.bf16.mxu0 %vm3507_vm0, %v3506_v2 }
0x17ba   :  { %3276 = vmatprep.subr.bf16.mxu0 %v3506_v2 }
0x17bb   :  { %v3465_v58 = vpop.eup %3464 }
0x17bc   :  { %v2046_v3 = vmul.f32 %v3465_v58, %v3461_v48  ;;  %v3390_v48 = vld [vmem:[%s4203_s5 + $0x10] sm:$0xff]  }
0x17be   :  { %v2048_v60 = vpack.c.bf16 %v2046_v3, %v2046_v3 }
0x17c0   :  { %3261 = vmatmul.mubr.msk.bf16.vlgmr.msra.gmra.mrb[64].mxu1 %vm148_vm2, %v2048_v60  ;;  %3267 = vmatmul.mubr.msk.bf16.vlgmr.msra.gmra.mrb[64].mxu0 %vm148_vm2, %v2146_v62 }
0x17c1   :  { %3271 = vmatpush3.bf16.xpose.msra.mxu1 %v2203_v63  ;;  %3272 = vmatprep.mubr.msk.bf16.mxu1 %vm3507_vm0, %v3506_v2 }
0x17c2   :  { %3282 = vmatprep.subr.bf16.mxu1 %v3506_v2  ;;  %3278 = vmatprep.mubr.msk.bf16.mxu0 %vm3507_vm0, %v3506_v2 }
0x17c8   :  { %3273 = vmatmul.mubr.msk.bf16.vlgmr.msra.gmra.mrb[68].mxu1 %vm148_vm2, %v2196_v0 }
0x17c9   :  { %3284 = vmatprep.mubr.msk.bf16.mxu1 %vm3507_vm0, %v3506_v2 }
0x188b   :  { %v2091_v1 = vpop.f32.mrb[60].mxu0 }
0x188c   :  { %v3256_v4 = vpop.f32.mrb[61].mxu0 }
0x188d   :  { %v2094_v5 = vpop.f32.mrb[62].mxu0 }
0x188e   :  { %v3257_v6 = vpop.f32.mrb[63].mxu0 }
0x1893   :  { %v2139_v8 = vpop.f32.mrb[64].mxu1  ;;  %v2189_v9 = vpop.f32.mrb[64].mxu0 }
0x1894   :  { %v3362_v12 = vpack.i.bf16 %v2139_v8, %v2091_v1  ;;  %v2245_v13 = vmul.f32 0.35355338, %v2189_v9  ;;  %v3262_v15 = vpop.f32.mrb[65].mxu1  ;;  %v3268_v16 = vpop.f32.mrb[65].mxu0 }
0x1895   :  { %v2142_v17 = vpop.f32.mrb[66].mxu1  ;;  %v2192_v18 = vpop.f32.mrb[66].mxu0 }
0x1896   :  { %v3263_v11 = vpop.f32.mrb[67].mxu1  ;;  %v3269_v20 = vpop.f32.mrb[67].mxu0  ;;  %v2247_v55 = vsel %vm148_vm2, %v2245_v13, -inf }
0x1897   :  { %2248 = vmax.xlane.f32.xlu1 %v2247_v55 }
0x189b   :  { %v2239_v59 = vpop.f32.mrb[68].mxu1 }
0x189c   :  { %v2246_v22 = vmul.f32 0.35355338, %v2239_v59  ;;  %v3274_v23 = vpop.f32.mrb[69].mxu1 }
0x189d   :  { %v2242_v24 = vpop.f32.mrb[70].mxu1 }
0x189e   :  { %v3275_v26 = vpop.f32.mrb[71].mxu1  ;;  %v2250_v27 = vsel %vm148_vm2, %v2246_v22, -inf }
0x189f   :  { %2251 = vmax.xlane.f32.xlu0 %v2250_v27 }
0x1924   :  { %v2249_v21 = vpop.xlane.xlu1 %2248 }
0x1925   :  { %v2253_v30 = vsub.f32 %v2245_v13, %v2249_v21 }
0x1927   :  { %v2255_v31 = vmul.f32 1.442695, %v2253_v30 }
0x1929   :  { %3466 = vpow2.f32 %v2255_v31 }
0x192c   :  { %v2252_v32 = vpop.xlane.xlu0 %2251 }
0x192d   :  { %v2254_v33 = vsub.f32 %v2246_v22, %v2252_v32 }
0x192f   :  { %v2257_v34 = vmul.f32 1.442695, %v2254_v33 }
0x1931   :  { %3468 = vpow2.f32 %v2257_v34 }
0x1933   :  { %v3467_v36 = vpop.eup %3466 }
0x1934   :  { %v2259_v37 = vsel %vm148_vm2, %v3467_v36, 0.0 }
0x1935   :  { %2260 = vadd.xlane.f32.xlu0 %v2259_v37 }
0x193b   :  { %v3469_v39 = vpop.eup %3468 }
0x193c   :  { %v2262_v40 = vsel %vm148_vm2, %v3469_v39, 0.0 }
0x193d   :  { %2263 = vadd.xlane.f32.xlu1 %v2262_v40  ;;  %v3394_v40 = vld [vmem:[%s4207_s9 + $0x40] sm:$0xff]  }
0x194b   :  { %2271 = vrot.lane.b32.xlu0 %v3932_v35, %s4229_s25 }
0x194e   :  { %2319 = vrot.lane.b32.xlu1 %v3934_v38, %s4229_s25 }
0x194f   :  { %3363 = vrot.lane.b32.xlu0 %v3362_v12, %s4230_s26 }
0x1952   :  { %3358 = vrot.lane.b32.xlu1 %v3357_v10, %s4231_s27 }
0x19c2   :  { %v2261_v41 = vpop.xlane.xlu0 %2260 }
0x19c3   :  { %3470 = vrcp.f32 %v2261_v41  ;;  %v3395_v41 = vld [vmem:[%s4207_s9 + $0x48] sm:$0xff]  }
0x19c6   :  { %v2272_v42 = vpop.permute.xlu0 %2271 }
0x19c7   :  { %v2277_v43 = vsel %vm275_vm3, %v2272_v42, 0  ;;  %v3396_v42 = vld [vmem:[%s4207_s9 + $0x50] sm:$0xff]  }
0x19c8   :  { %3277 = vmatpush3.bf16.msra.mxu0 %v2277_v43  ;;  %v3397_v43 = vld [vmem:[%s4207_s9 + $0x58] sm:$0xff]  }
0x19c9   :  { %3288 = vmatprep.subr.bf16.mxu0 %v3506_v2 }
0x19ca   :  { %v2264_v44 = vpop.xlane.xlu1 %2263  ;;  %v3364_v63 = vpop.permute.xlu0 %3363 }
0x19cb   :  { %3472 = vrcp.f32 %v2264_v44  ;;  %v3366_v4 = vunpack.i.h.bf16 %v3364_v63  ;;  %v3365_v5 = vunpack.i.l.bf16 %v3364_v63  ;;  %v3398_v44 = vld [vmem:[%s4207_s9 + $0x60] sm:$0xff]  }
0x19cd   :  { %v3471_v35 = vpop.eup %3470 }
0x19ce   :  { %v2267_v45 = vmul.f32 %v3471_v35, %v3467_v36  ;;  %v2320_v38 = vpop.permute.xlu1 %2319  ;;  %v3399_v35 = vld [vmem:[%s4207_s9 + $0x68] sm:$0xff]  }
0x19cf   :  { %v2325_v46 = vsel %vm275_vm3, %v2320_v38, 0 }
0x19d0   :  { %3283 = vmatpush3.bf16.msra.mxu1 %v2325_v46  ;;  %v2269_v47 = vpack.c.bf16 %v2267_v45, %v2267_v45 }
0x19d1   :  { %3296 = vmatprep.subr.bf16.mxu1 %v3506_v2 }
0x19d2   :  { %3279 = vmatmul.mubr.msk.bf16.vlgmr.msra.gmra.mrb[68].mxu0 %vm148_vm2, %v2269_v47  ;;  %v3359_v7 = vpop.permute.xlu1 %3358 }
0x19d3   :  { %3292 = vmatprep.mubr.msk.bf16.mxu0 %vm3507_vm0, %v3506_v2  ;;  %3289 = vmatpush3.bf16.msra.mxu0 %v3390_v48  ;;  %v3361_v60 = vunpack.i.h.bf16 %v3359_v7  ;;  %v3360_v62 = vunpack.i.l.bf16 %v3359_v7  ;;  %v3401_v7 = vld [vmem:[%s4207_s9 + $0x78] sm:$0xff]  }
0x19d4   :  { %3290 = vmatprep.subr.bf16.mxu0 %v3506_v2 }
0x19d5   :  { %v3473_v14 = vpop.eup %3472  ;;  %v2392_v0 = vsel %vm148_vm2, %v3990_v25, %v3361_v60  ;;  %v2391_v1 = vsel %vm148_vm2, %v3988_v61, %v3360_v62  ;;  %v2895_v61 = vld [vmem:[%s4204_s6 + $0x1] ss:$0 sm:$0xff] }
0x19d6   :  { %v2268_v19 = vmul.f32 %v3473_v14, %v3469_v39  ;;  %v2393_v12 = vsel %vm1059_vm4, %v2391_v1, %v3365_v5  ;;  %v2394_v13 = vsel %vm1059_vm4, %v2392_v0, %v3366_v4  ;;  %v3393_v39 = vld [vmem:[%s4205_s7 + $0x18] sm:$0xff]   ;;  %v2908_v60 = vld [vmem:[%s4206_s8 + $0x1] ss:$0 sm:$0xff] }
0x19d7   :  { %3291 = vmatpush3.bf16.msra.mxu0 %v3391_v49  ;;  %v2901_v49 = vld [vmem:[%s4209_s11 + $0x1] ss:$0 sm:$0xff] }
0x19d8   :  { %v2270_v10 = vpack.c.bf16 %v2268_v19, %v2268_v19  ;;  %3304 = vmatprep.subr.bf16.mxu0 %v3506_v2 }
0x19da   :  { %3285 = vmatmul.mubr.msk.bf16.vlgmr.msra.gmra.mrb[72].mxu1 %vm148_vm2, %v2270_v10 }
0x19db   :  { %3300 = vmatprep.mubr.msk.bf16.mxu1 %vm3507_vm0, %v3506_v2 }
0x1aa5   :  { %v2313_v50 = vpop.f32.mrb[68].mxu0 }
0x1aa6   :  { %v3280_v51 = vpop.f32.mrb[69].mxu0 }
0x1aa7   :  { %v2316_v52 = vpop.f32.mrb[70].mxu0 }
0x1aa8   :  { %v3281_v53 = vpop.f32.mrb[71].mxu0 }
0x1aa9   :  { %v2902_v53 = vld [vmem:[%s4210_s12 + $0x1] ss:$0 sm:$0xff] }
0x1aad   :  { %v2361_v54 = vpop.f32.mrb[72].mxu1 }
0x1aae   :  { %v3367_v56 = vpack.i.bf16 %v2361_v54, %v2313_v50  ;;  %v3286_v57 = vpop.f32.mrb[73].mxu1 }
0x1aaf   :  { %v2364_v58 = vpop.f32.mrb[74].mxu1 }
0x1ab0   :  { %3368 = vrot.lane.b32.xlu1 %v3367_v56, %s4232_s30  ;;  %v3287_v3 = vpop.f32.mrb[75].mxu1 }
0x1ab1   :  { %v3400_v3 = vld [vmem:[%s4207_s9 + $0x70] sm:$0xff]  }
0x1b22   :  { %v3369_v6 = vpop.permute.xlu1 %3368 }
0x1b23   :  { %v3371_v8 = vunpack.i.h.bf16 %v3369_v6  ;;  %v3370_v9 = vunpack.i.l.bf16 %v3369_v6 }
0x1b25   :  { %v2396_v15 = vsel %vm1062_vm5, %v2394_v13, %v3371_v8  ;;  %v2395_v16 = vsel %vm1062_vm5, %v2393_v12, %v3370_v9 }
0x1b26   :  { %v2397_v17 = vpack.c.bf16 %v2396_v15, %v2395_v16 }
0x1b28   :  { %3293 = vmatmul.mubr.msk.bf16.vlgmr.msra.gmra.mrb[72].mxu0 %vm98_vm1, %v2397_v17 }
0x1b29   :  { %3320 = vmatprep.mubr.msk.bf16.mxu0 %vm3507_vm0, %v3506_v2  ;;  %3305 = vmatpush3.bf16.msra.mxu0 %v3394_v40 }
0x1b2a   :  { %3306 = vmatprep.subr.bf16.mxu0 %v3506_v2 }
0x1b2d   :  { %3307 = vmatpush3.bf16.msra.mxu0 %v3395_v41 }
0x1b2e   :  { %3308 = vmatprep.subr.bf16.mxu0 %v3506_v2 }
0x1b31   :  { %3309 = vmatpush3.bf16.msra.mxu0 %v3396_v42  ;;  %v2941_v42 = vld [vmem:[%s4212_s14 + $0x1] ss:$0 sm:$0xff] }
0x1b32   :  { %3310 = vmatprep.subr.bf16.mxu0 %v3506_v2 }
0x1b35   :  { %3311 = vmatpush3.bf16.msra.mxu0 %v3397_v43 }
0x1b36   :  { %3312 = vmatprep.subr.bf16.mxu0 %v3506_v2 }
0x1b39   :  { %3313 = vmatpush3.bf16.msra.mxu0 %v3398_v44 }
0x1b3a   :  { %3314 = vmatprep.subr.bf16.mxu0 %v3506_v2 }
0x1b3d   :  { %3315 = vmatpush3.bf16.msra.mxu0 %v3399_v35  ;;  %v2942_v35 = vld [vmem:[%s4213_s15] ss:$0 sm:$0xff] }
0x1b3e   :  { %3316 = vmatprep.subr.bf16.mxu0 %v3506_v2 }
0x1b41   :  { %3317 = vmatpush3.bf16.msra.mxu0 %v3400_v3 }
0x1b42   :  { %3318 = vmatprep.subr.bf16.mxu0 %v3506_v2 }
0x1b45   :  { %3319 = vmatpush3.bf16.msra.mxu0 %v3401_v7 }
0x1bfb   :  { %v2460_v25 = vpop.f32.mrb[72].mxu0 }
0x1bfc   :  { %v2461_v18 = vadd.f32 %v2895_v61, %v2460_v25  ;;  %v3294_v11 = vpop.f32.mrb[73].mxu0 }
0x1bfd   :  { %v2463_v20 = vpop.f32.mrb[74].mxu0 }
0x1bfe   :  { %v2464_v55 = vadd.f32 %v2895_v61, %v2463_v20  ;;  %v3295_v59 = vpop.f32.mrb[75].mxu0  ;;  %v2467_v22 = vadd.f32 %v2461_v18, %v3920_v28 }
0x1c00   :  { %v2468_v23 = vadd.f32 %v2464_v55, %v3922_v29  ;;  %v2473_v24 = vsel %vm98_vm1, %v2467_v22, 0.0  ;;  %v3392_v29 = vld [vmem:[%s4205_s7 + $0x10] sm:$0xff]  }
0x1c01   :  { %2474 = vadd.xlane.f32.xlu0 %v2473_v24  ;;  %3297 = vmatpush3.bf16.msra.mxu1 %v3392_v29 }
0x1c02   :  { %v2476_v26 = vsel %vm98_vm1, %v2468_v23, 0.0  ;;  %3298 = vmatprep.subr.bf16.mxu1 %v3506_v2  ;;  %v2929_v2 = vld [vmem:[%s4208_s10 + $0x1] ss:$0 sm:$0xff] }
0x1c03   :  { %2477 = vadd.xlane.f32.xlu1 %v2476_v26 }
0x1c05   :  { %3299 = vmatpush3.bf16.msra.mxu1 %v3393_v39  ;;  %v2940_v39 = vld [vmem:[%s4211_s13 + $0x1] ss:$0 sm:$0xff]  ;;  %s3523_s13 = smov [#allocation3]  }
0x1c06   :  { %s2815_s14 = sshll.u32 %s3523_s13, 4  ;;  %s2816_s14 = int_to_ptr.vmem [resolvable:$true] %s2815_s14 }
0x1c07   :  { %s3482_s15 = scalar_lea.vmem %s2816_s14, 16  ;;  %s3486_s23 = scalar_lea.vmem %s2816_s14, 32 }
0x1c08   :  { %p3483_p0 = scmp.ne.s32.totalorder %s2816_s14, %s3482_s15  ;;  %p3487_p1 = scmp.lt.s32.totalorder %s2816_s14, %s2816_s14 }
0x1c09   :  { %p3488_p2 = scmp.lt.s32.totalorder %s3486_s23, %s3482_s15 }
0x1c0b   :  { %p3489_p3 = por %p3488_p2, %p3487_p1 }
0x1c0d   :  { %p3490_p4 = pnand %p3489_p3, %p3483_p0 }
0x1c8e   :  { %v2475_v27 = vpop.xlane.xlu0 %2474 }
0x1c8f   :  { %v2479_v21 = vmul.f32 0.03125, %v2475_v27 }
0x1c90   :  { %v2478_v30 = vpop.xlane.xlu1 %2477 }
0x1c91   :  { %v2481_v31 = vsub.f32 %v2467_v22, %v2479_v21  ;;  %v2480_v32 = vmul.f32 0.03125, %v2478_v30 }
0x1c93   :  { %v2482_v33 = vsub.f32 %v2468_v23, %v2480_v32  ;;  %v2483_v34 = vmul.f32 %v2481_v31, %v2481_v31 }
0x1c95   :  { %v2485_v36 = vsel %vm98_vm1, %v2483_v34, 0.0  ;;  %v2484_v37 = vmul.f32 %v2482_v33, %v2482_v33 }
0x1c96   :  { %2486 = vadd.xlane.f32.xlu0 %v2485_v36 }
0x1c97   :  { %v2488_v28 = vsel %vm98_vm1, %v2484_v37, 0.0 }
0x1c9a   :  { %2489 = vadd.xlane.f32.xlu0 %v2488_v28 }
0x1d23   :  { %v2487_v45 = vpop.xlane.xlu0 %2486 }
0x1d24   :  { %v2491_v38 = vmul.f32 0.03125, %v2487_v45 }
0x1d26   :  { %v2493_v46 = vadd.f32 1e-05, %v2491_v38 }
0x1d27   :  { %v2490_v47 = vpop.xlane.xlu0 %2489 }
0x1d28   :  { %3474 = vrsqrt.f32 %v2493_v46  ;;  %v2492_v14 = vmul.f32 0.03125, %v2490_v47 }
0x1d2a   :  { %v2494_v19 = vadd.f32 1e-05, %v2492_v14 }
0x1d2c   :  { %3476 = vrsqrt.f32 %v2494_v19 }
0x1d32   :  { %v3475_v10 = vpop.eup %3474 }
0x1d33   :  { %v2497_v48 = vmul.f32 %v3475_v10, %v2481_v31 }
0x1d35   :  { %v2505_v51 = vmul.f32 %v2901_v49, %v2497_v48 }
0x1d36   :  { %v3477_v50 = vpop.eup %3476 }
0x1d37   :  { %v2498_v52 = vmul.f32 %v3477_v50, %v2482_v33  ;;  %v2513_v56 = vadd.f32 %v2902_v53, %v2505_v51  ;;  %v2943_v50 = vld [vmem:[#allocation2] ss:$0 sm:$0xff] }
0x1d39   :  { %v2506_v54 = vmul.f32 %v2901_v49, %v2498_v52  ;;  %v3522_v49 = vmov 0  }
0x1d3a   :  { %3372 = vset.pattern.permute.xlu1 %v3522_v49  ;;  %3373 = vset.pattern.permute.xlu0 %v3522_v49 }
0x1d3b   :  { %v2514_v57 = vadd.f32 %v2902_v53, %v2506_v54 }
0x1d3d   :  { %v2515_v58 = vpack.c.bf16 %v2514_v57, %v2513_v56 }
0x1d3f   :  { %3301 = vmatmul.mubr.msk.bf16.vlgmr.msra.gmra.mrb[76].mxu1 %vm98_vm1, %v2515_v58 }
0x1e12   :  { %v2578_v62 = vpop.f32.mrb[76].mxu1 }
0x1e13   :  { %v2579_v63 = vadd.f32 %v2908_v60, %v2578_v62  ;;  %v3302_v0 = vpop.f32.mrb[77].mxu1 }
0x1e14   :  { %v2581_v1 = vpop.f32.mrb[78].mxu1 }
0x1e15   :  { %v2582_v4 = vadd.f32 %v2908_v60, %v2581_v1  ;;  %v3303_v5 = vpop.f32.mrb[79].mxu1  ;;  %v2585_v6 = vmax.f32 %v2579_v63, 0.0 }
0x1e17   :  { %v2586_v8 = vmax.f32 %v2582_v4, 0.0 }
0x1e19   :  { %v2587_v9 = vpack.c.bf16 %v2586_v8, %v2585_v6 }
0x1e1b   :  { %3321 = vmatmul.mubr.bf16.vlgmr.msra.gmra.mrb[76].mxu0 %v2587_v9 }
0x1eee   :  { %v2695_v12 = vpop.f32.mrb[76].mxu0 }
0x1eef   :  { %v2696_v13 = vadd.f32 %v2929_v2, %v2695_v12  ;;  %v3322_v15 = vpop.f32.mrb[77].mxu0 }
0x1ef0   :  { %v2698_v16 = vpop.f32.mrb[78].mxu0 }
0x1ef1   :  { %v2699_v17 = vadd.f32 %v2929_v2, %v2698_v16  ;;  %v3323_v61 = vpop.f32.mrb[79].mxu0  ;;  %v2702_v25 = vadd.f32 %v2696_v13, %v2513_v56  ;;  %v2781_v56 = vlaneseq }
0x1ef3   :  { %v2703_v18 = vadd.f32 %v2699_v17, %v2514_v57  ;;  %v2708_v11 = vsel %vm98_vm1, %v2702_v25, 0.0  ;;  %v2782_v57 = vand.u32 127, %v2781_v56  ;;  %v2784_v58 = vshrl.u32 %v2781_v56, 7 }
0x1ef4   :  { %2709 = vadd.xlane.f32.xlu0 %v2708_v11 }
0x1ef5   :  { %v2711_v20 = vsel %vm98_vm1, %v2703_v18, 0.0  ;;  %vm2785_vm9 = vcmp.eq.s32.totalorder %v2782_v57, %v2784_v58 }
0x1ef6   :  { %2712 = vadd.xlane.f32.xlu1 %v2711_v20 }
0x1f81   :  { %v2710_v55 = vpop.xlane.xlu0 %2709 }
0x1f82   :  { %v2714_v59 = vmul.f32 0.03125, %v2710_v55 }
0x1f83   :  { %v2713_v22 = vpop.xlane.xlu1 %2712 }
0x1f84   :  { %v2716_v23 = vsub.f32 %v2702_v25, %v2714_v59  ;;  %v2715_v24 = vmul.f32 0.03125, %v2713_v22 }
0x1f86   :  { %v2717_v26 = vsub.f32 %v2703_v18, %v2715_v24  ;;  %v2718_v27 = vmul.f32 %v2716_v23, %v2716_v23 }
0x1f88   :  { %v2720_v21 = vsel %vm98_vm1, %v2718_v27, 0.0  ;;  %v2719_v30 = vmul.f32 %v2717_v26, %v2717_v26 }
0x1f89   :  { %2721 = vadd.xlane.f32.xlu0 %v2720_v21 }
0x1f8a   :  { %v2723_v31 = vsel %vm98_vm1, %v2719_v30, 0.0 }
0x1f8b   :  { %2724 = vadd.xlane.f32.xlu1 %v2723_v31 }
0x2016   :  { %v2722_v32 = vpop.xlane.xlu0 %2721 }
0x2017   :  { %v2726_v33 = vmul.f32 0.03125, %v2722_v32 }
0x2018   :  { %v2725_v34 = vpop.xlane.xlu1 %2724 }
0x2019   :  { %v2728_v36 = vadd.f32 1e-05, %v2726_v33  ;;  %v2727_v37 = vmul.f32 0.03125, %v2725_v34 }
0x201b   :  { %3478 = vrsqrt.f32 %v2728_v36  ;;  %v2729_v28 = vadd.f32 1e-05, %v2727_v37 }
0x201d   :  { %3480 = vrsqrt.f32 %v2729_v28 }
0x2025   :  { %v3479_v29 = vpop.eup %3478 }
0x2026   :  { %v2732_v40 = vmul.f32 %v3479_v29, %v2716_v23 }
0x2027   :  { %v3481_v41 = vpop.eup %3480 }
0x2028   :  { %v2740_v43 = vmul.f32 %v2940_v39, %v2732_v40  ;;  %v2733_v44 = vmul.f32 %v3481_v41, %v2717_v26 }
0x202a   :  { %v2748_v45 = vadd.f32 %v2941_v42, %v2740_v43  ;;  %v2741_v38 = vmul.f32 %v2940_v39, %v2733_v44 }
0x202c   :  { %v2757_v46 = vmul.f32 %v2942_v35, %v2748_v45  ;;  %v2749_v47 = vadd.f32 %v2941_v42, %v2741_v38 }
0x202e   :  { %v2765_v14 = vsel %vm2764_vm6, %v2757_v46, 0.0  ;;  %v2758_v19 = vmul.f32 %v2942_v35, %v2749_v47 }
0x202f   :  { %2766 = vadd.xlane.f32.xlu1 %v2765_v14 }
0x2030   :  { %v2761_v10 = vrot.slane %v2758_v19, 7 }
0x2032   :  { %v2769_v48 = vsel %vm2768_vm7, %v2761_v10, 0.0 }
0x2033   :  { %2770 = vadd.xlane.f32.xlu0 %v2769_v48 }
0x20bc   :  { %v2767_v51 = vpop.xlane.xlu1 %2766 }
0x20bd   :  { %v2779_v52 = vadd.f32 %v2943_v50, %v2767_v51 }
0x20bf   :  { %2788 = vperm.xlu1 %3372, %v2779_v52  }
0x20c0   :  { %v2771_v53 = vpop.xlane.xlu0 %2770 }
0x20c1   :  { %v2780_v54 = vadd.f32 %v2943_v50, %v2771_v53 }
0x20c3   :  { %2792 = vperm.xlu0 %3373, %v2780_v54  }
0x213e   :  { %v2789_v3 = vpop.permute.xlu1 %2788 }
0x213f   :  { %v2795_v60 = vrot.slane %v2789_v3, 7 }
0x2142   :  { %v2793_v7 = vpop.permute.xlu0 %2792 }
0x2143   :  { %v2796_v62 = vrot.slane %v2793_v7, 7 }
0x2145   :  { %v2797_v63 = vsel %vm2794_vm8, %v2795_v60, %v2796_v62 }
0x2146   :  { %v2799_v0 = vsel %vm2785_vm9, %v2797_v63, 0.0 }
0x2147   :  { %v2801_v1 = vsel %vm2800_vm10, %v2799_v0, 0.0 }
0x2148   :  { %v2802_v4 = vrot.slane %v2801_v1, 4 }
0x214a   :  { %v2803_v5 = vadd.f32 %v2802_v4, %v2801_v1 }
0x214c   :  { %v2804_v6 = vrot.slane %v2803_v5, 2 }
0x214e   :  { %v2805_v8 = vadd.f32 %v2804_v6, %v2803_v5 }
0x2150   :  { %v2806_v9 = vrot.slane %v2805_v8, 1 }
0x2152   :  { %v2807_v2 = vadd.f32 %v2806_v9, %v2805_v8 }
0x2154   :  { %2808 = vst [vmem:[#allocation3] sm:$0x1] %v2807_v2 }
0x2155   :  { %3493 = shalt.err (!%p3490_p4)
}
0x2156   :  { %s3494_s7 = scalar_lea.hbm %s4215_s17, 16 }
0x2157   :  { %p3495_p5 = scmp.ne.s32.totalorder %s4215_s17, %s3494_s7  ;;  %p3498_p6 = scmp.lt.u32.totalorder %s3494_s7, %s4215_s17 }
0x2159   :  { %p3500_p7 = pnand %p3498_p6, %p3495_p5 }
0x215b   :  { %3503 = shalt.err (!%p3500_p7)
}
0x215c   :  { %2818 = dma.vmem_to_hbm [thread:$0]  %s2816_s14, 16, %s4215_s17, [#allocation4]  }
0x215d   :  { %3504 = dma.done.wait [#allocation4], 16  }
0x215e   :  { %3505 = vsyncadd [#allocation4], 4294967280 }
0x215f   :  { %2822 = vsyncpa [#allocation4], 1 }

</bundles_post_ra>
